<compile_context>
chip_gen: v6e
topology: v6e:2x2x1
jax: 0.10.0
libtpu: 0.0.40
codegen_flags: <defaults>
</compile_context>

<pallas_src>
import jax
import jax.numpy as jnp
from jax.experimental import pallas as pl
from jax.experimental.pallas import tpu as pltpu

# MPS configuration (static).
N = 4     # number of sites
D = 4     # physical (feature) dimension per site
R = 8     # bond dimension
C = 8     # output label dimension

# Review: per-row working set is ~1 KiB, so big blocks amortize the ~0.35 us
# per-grid-step overhead.  4096 keeps the fused-path working set (~9 MiB) under
# the v5e 16 MiB / v7x 32 MiB scoped-VMEM defaults; sweep 2048-8192 if needed.
DEFAULT_BLOCK_B = 4096


def _round_up(v, m):
    return ((v + m - 1) // m) * m


def _pick_block(batch, block_b):
    """Lane-dense batch block; keep >= 2 grid steps when batch allows (v7x)."""
    block_b = max(128, (block_b // 128) * 128)
    bblk = max(128, min(block_b, _round_up(batch, 128)))
    if batch >= 2 * 128 and pl.cdiv(batch, bblk) < 2:
        bblk = _round_up(pl.cdiv(batch, 2), 128)
    return bblk


def _mps_chain(xt, w_ref, out_ref):
    """Contract the 4-site MPS chain.

    xt     : (N*D, bblk) f32 value — features on sublanes, batch on lanes.
    w_ref  : (2R + R + C*R, D*R) resident weight slab (DMA'd once).
    out_ref: (C, bblk) output block (lane-dense store).
    """
    bblk = xt.shape[-1]

    bnd = w_ref[0:2 * R, 0:N * D]            # (2R, N*D): [c0^T | 0 | 0 | c3]
    w1 = w_ref[2 * R:3 * R, :]               # (R,   D*R)
    w2 = w_ref[3 * R:3 * R + C * R, :]       # (C*R, D*R)

    # Sites 0 & 3 fused into ONE boundary matmul: rows [0:R)=v0, [R:2R)=m3.
    vb = jnp.dot(bnd, xt, preferred_element_type=jnp.float32)        # (2R, bblk)
    v = vb[0:R, :]                                                    # (R, bblk)
    m3 = vb[R:2 * R, :]                                               # (R, bblk)

    # Site 1: vx[d*R+i, b] = x1[d, b] * v[i, b]; one fused matmul with K = D*R.
    x1 = xt[D:2 * D, :]
    vx = (x1[:, None, :] * v[None, :, :]).reshape(D * R, bblk)
    v = jnp.dot(w1, vx, preferred_element_type=jnp.float32)          # (R, bblk)

    # Site 2 (label-carrying core): same fusion, (C*R, bblk) result.
    x2 = xt[2 * D:3 * D, :]
    vx = (x2[:, None, :] * v[None, :, :]).reshape(D * R, bblk)
    t = jnp.dot(w2, vx, preferred_element_type=jnp.float32)          # (C*R, bblk)

    # Close the chain: out[c, b] = sum_j t[c*R + j, b] * m3[j, b].
    # Implicit broadcast over the label axis (no m3_rep materialization), then
    # one block-ones selector matmul on the otherwise-idle MXU; the selector is
    # built in-kernel from iotas (no extra input stream).
    prod = (t.reshape(C, R, bblk) * m3[None, :, :]).reshape(C * R, bblk)
    row = jax.lax.broadcasted_iota(jnp.int32, (C, C * R), 0)
    col = jax.lax.broadcasted_iota(jnp.int32, (C, C * R), 1)
    sel = ((col >= row * R) & (col < (row + 1) * R)).astype(jnp.float32)
    out_ref[...] = jnp.dot(sel, prod, preferred_element_type=jnp.float32)


def _tn_kernel_fused_transpose(x_ref, w_ref, out_ref):
    # x_ref: (bblk, N*D) straight from HBM (no host relayout pass); the
    # (bblk, 16) -> (16, bblk) relayout rides the XLU inside the kernel.
    _mps_chain(jnp.transpose(x_ref[...], (1, 0)), w_ref, out_ref)


def _tn_kernel_pretransposed(x_ref, w_ref, out_ref):
    # x_ref: (N*D, bblk) — fallback path fed by one host-side relayout of x.
    _mps_chain(x_ref[...], w_ref, out_ref)


def _pack_weights(core0, core1, core2, core3):
    """Pack all cores into one resident (2R + R + C*R, D*R) f32 slab."""
    c0t = jnp.transpose(core0, (1, 0)).astype(jnp.float32)            # (R, D)
    c3 = core3.astype(jnp.float32)                                    # (R, D)
    bnd = jnp.zeros((2 * R, D * R), jnp.float32)
    bnd = bnd.at[0:R, 0:D].set(c0t)                 # site-0 feature columns
    bnd = bnd.at[R:2 * R, 3 * D:4 * D].set(c3)      # site-3 feature columns
    # W1[j, d*R + i] = core1[i, d, j]
    w1 = jnp.transpose(core1, (2, 1, 0)).reshape(R, D * R).astype(jnp.float32)
    # W2[c*R + j, d*R + i] = core2[i, d, c, j]
    w2 = jnp.transpose(core2, (2, 3, 1, 0)).reshape(C * R, D * R).astype(jnp.float32)
    return jnp.concatenate([bnd, w1, w2], axis=0)   # (88, 32)


def tensor_network_layer_forward(x, core0, core1, core2, core3,
                                 *, block_b=DEFAULT_BLOCK_B):
    """x: (B, N, D). Returns (B, C) float32."""
    batch = x.shape[0]
    assert x.shape[1:] == (N, D)

    bblk = _pick_block(batch, block_b)
    grid = (pl.cdiv(batch, bblk),)          # ragged tail = partial block (no pad)

    x_flat = x.reshape(batch, N * D).astype(jnp.float32)   # free, contiguous
    w_all = _pack_weights(core0, core1, core2, core3)

    flops = 2 * batch * (2 * R * N * D + R * D * R + C * R * D * R + C * C * R)
    cost = pl.CostEstimate(flops=int(flops), transcendentals=0,
                           bytes_accessed=int(batch * (N * D + C) * 4
                                              + w_all.size * 4))

    w_spec = pl.BlockSpec((3 * R + C * R, D * R), lambda i: (0, 0))   # resident
    common = dict(
        out_shape=jax.ShapeDtypeStruct((C, batch), jnp.float32),
        grid=grid,
        out_specs=pl.BlockSpec((C, bblk), lambda i: (0, i)),          # lane-dense
        compiler_params=pltpu.CompilerParams(
            dimension_semantics=("parallel",),        # v7x: feed both TCs
            vmem_limit_bytes=32 * 1024 * 1024),
        cost_estimate=cost,
    )

    # Primary path: x stays in its natural (B, N*D) HBM layout; the transpose
    # to batch-on-lanes happens per tile inside the kernel (saves two full HBM
    # passes over x vs. host-side transpose+pad).  If in-kernel 2-D transpose
    # ever fails to lower on an older Mosaic, fall back to one host relayout.
    # (The fallback only triggers in eager mode; under jit the primary is used.)
    try:
        out_cb = pl.pallas_call(
            _tn_kernel_fused_transpose,
            in_specs=[pl.BlockSpec((bblk, N * D), lambda i: (i, 0)), w_spec],
            **common,
        )(x_flat, w_all)
        out_cb = jax.block_until_ready(out_cb)
    except Exception:  # pragma: no cover — lowering-capability safety net
        xt_host = jnp.transpose(x_flat, (1, 0))       # one extra HBM pass
        out_cb = pl.pallas_call(
            _tn_kernel_pretransposed,
            in_specs=[pl.BlockSpec((N * D, bblk), lambda i: (0, i)), w_spec],
            **common,
        )(xt_host, w_all)

    return jnp.transpose(out_cb, (1, 0))              # (B, C), tiny relayout


def _reference(x, core0, core1, core2, core3):
    v = jnp.einsum('bd,di->bi', x[:, 0, :], core0)                   # (B, R)
    v = jnp.einsum('bi,bd,idj->bj', v, x[:, 1, :], core1)            # (B, R)
    t = jnp.einsum('bi,bd,idcj->bcj', v, x[:, 2, :], core2)          # (B, C, R)
    m3 = jnp.einsum('bd,jd->bj', x[:, 3, :], core3)                  # (B, R)
    return jnp.einsum('bcj,bj->bc', t, m3)                           # (B, C)


if __name__ == "__main__":
    BATCH = 300   # not a multiple of the batch block: exercises the ragged tail

    key = jax.random.PRNGKey(0)
    kx, k0, k1, k2, k3 = jax.random.split(key, 5)

    # Deterministic synthetic parameters (shapes follow the MPS cores above).
    x = jax.random.normal(kx, (BATCH, N, D), dtype=jnp.float32) * 0.5
    core0 = jax.random.normal(k0, (D, R), dtype=jnp.float32) * 0.3
    core1 = jax.random.normal(k1, (R, D, R), dtype=jnp.float32) * 0.3
    core2 = jax.random.normal(k2, (R, D, C, R), dtype=jnp.float32) * 0.3
    core3 = jax.random.normal(k3, (R, D), dtype=jnp.float32) * 0.3

    out = tensor_network_layer_forward(x, core0, core1, core2, core3)
    out = jax.block_until_ready(out)

    ref = _reference(x, core0, core1, core2, core3)
    assert out.shape == (BATCH, C)
    assert jnp.allclose(out, ref, atol=1e-4, rtol=1e-4), "mismatch vs reference"

    # TODO(synk): node_states / load_node_states / cuda / to / cpu are stateful
    # PyTorch bookkeeping with no kernel equivalent; only forward() is here.
    print("KERNEL_OK")
</pallas_src>

<mosaic_0001>
module attributes {stable_mosaic.version = 11 : i64} {
  func.func @_tn_kernel_fused_transpose(%arg0: i32, %arg1: memref<256x16xf32, #tpu.memory_space<vmem>>, %arg2: memref<88x32xf32, #tpu.memory_space<vmem>>, %arg3: memref<8x256xf32, #tpu.memory_space<vmem>>) attributes {dimension_semantics = [#tpu.dimension_semantics<parallel>], iteration_bounds = array<i64: 2>, scalar_prefetch = 0 : i64, scratch_operands = 0 : i64, tpu.core_type = #tpu.core_type<tc>, window_params = [{transform_indices = @transform_0, window_bounds = array<i64: 256, 16>}, {pipeline_mode = #tpu.pipeline_mode<synchronous>, transform_indices = @transform_1, window_bounds = array<i64: 88, 32>}, {transform_indices = @transform_2, window_bounds = array<i64: 8, 256>}]} {
    %c0 = arith.constant 0 : index
    %c0_0 = arith.constant 0 : index
    %0 = vector.load %arg1[%c0, %c0_0] : memref<256x16xf32, #tpu.memory_space<vmem>>, vector<256x16xf32>
    %1 = tpu.transpose %0, [1, 0] : vector<256x16xf32> -> vector<16x256xf32>
    %c0_1 = arith.constant 0 : index
    %c0_2 = arith.constant 0 : index
    %2 = vector.load %arg2[%c0_1, %c0_2] : memref<88x32xf32, #tpu.memory_space<vmem>>, vector<16x16xf32>
    %c16 = arith.constant 16 : index
    %c0_3 = arith.constant 0 : index
    %3 = vector.load %arg2[%c16, %c0_3] : memref<88x32xf32, #tpu.memory_space<vmem>>, vector<8x32xf32>
    %c24 = arith.constant 24 : index
    %c0_4 = arith.constant 0 : index
    %4 = vector.load %arg2[%c24, %c0_4] : memref<88x32xf32, #tpu.memory_space<vmem>>, vector<64x32xf32>
    %cst = arith.constant dense<0.000000e+00> : vector<16x256xf32>
    %5 = tpu.matmul %2, %1, %cst {dimension_numbers = #tpu.dot_dimension_numbers<[1], [0], [0], [1], [0, 0, 1, 1], [], []>} : vector<16x16xf32>, vector<16x256xf32>, vector<16x256xf32> -> vector<16x256xf32>
    %6 = vector.extract_strided_slice %5 {offsets = [0, 0], sizes = [8, 256], strides = [1, 1]} : vector<16x256xf32> to vector<8x256xf32>
    %7 = vector.extract_strided_slice %5 {offsets = [8, 0], sizes = [8, 256], strides = [1, 1]} : vector<16x256xf32> to vector<8x256xf32>
    %8 = vector.extract_strided_slice %1 {offsets = [4, 0], sizes = [4, 256], strides = [1, 1]} : vector<16x256xf32> to vector<4x256xf32>
    %9 = vector.shape_cast %8 : vector<4x256xf32> to vector<4x1x256xf32>
    %10 = vector.shape_cast %6 : vector<8x256xf32> to vector<1x8x256xf32>
    %11 = vector.broadcast %9 : vector<4x1x256xf32> to vector<4x8x256xf32>
    %12 = vector.broadcast %10 : vector<1x8x256xf32> to vector<4x8x256xf32>
    %13 = arith.mulf %11, %12 : vector<4x8x256xf32>
    %14 = vector.shape_cast %13 : vector<4x8x256xf32> to vector<32x256xf32>
    %cst_5 = arith.constant dense<0.000000e+00> : vector<8x256xf32>
    %15 = tpu.matmul %3, %14, %cst_5 {dimension_numbers = #tpu.dot_dimension_numbers<[1], [0], [0], [1], [0, 0, 1, 1], [], []>} : vector<8x32xf32>, vector<32x256xf32>, vector<8x256xf32> -> vector<8x256xf32>
    %16 = vector.extract_strided_slice %1 {offsets = [8, 0], sizes = [4, 256], strides = [1, 1]} : vector<16x256xf32> to vector<4x256xf32>
    %17 = vector.shape_cast %16 : vector<4x256xf32> to vector<4x1x256xf32>
    %18 = vector.shape_cast %15 : vector<8x256xf32> to vector<1x8x256xf32>
    %19 = vector.broadcast %17 : vector<4x1x256xf32> to vector<4x8x256xf32>
    %20 = vector.broadcast %18 : vector<1x8x256xf32> to vector<4x8x256xf32>
    %21 = arith.mulf %19, %20 : vector<4x8x256xf32>
    %22 = vector.shape_cast %21 : vector<4x8x256xf32> to vector<32x256xf32>
    %cst_6 = arith.constant dense<0.000000e+00> : vector<64x256xf32>
    %23 = tpu.matmul %4, %22, %cst_6 {dimension_numbers = #tpu.dot_dimension_numbers<[1], [0], [0], [1], [0, 0, 1, 1], [], []>} : vector<64x32xf32>, vector<32x256xf32>, vector<64x256xf32> -> vector<64x256xf32>
    %24 = vector.shape_cast %23 : vector<64x256xf32> to vector<8x8x256xf32>
    %25 = vector.shape_cast %7 : vector<8x256xf32> to vector<1x8x256xf32>
    %26 = vector.broadcast %25 : vector<1x8x256xf32> to vector<8x8x256xf32>
    %27 = arith.mulf %24, %26 : vector<8x8x256xf32>
    %28 = vector.shape_cast %27 : vector<8x8x256xf32> to vector<64x256xf32>
    %29 = tpu.iota {dimensions = array<i32: 0>} : vector<8x64xi32>
    %30 = tpu.iota {dimensions = array<i32: 1>} : vector<8x64xi32>
    %c8_i32 = arith.constant 8 : i32
    %31 = vector.broadcast %c8_i32 : i32 to vector<8x64xi32>
    %32 = arith.muli %29, %31 : vector<8x64xi32>
    %33 = arith.cmpi sge, %30, %32 : vector<8x64xi32>
    %c1_i32 = arith.constant 1 : i32
    %34 = vector.broadcast %c1_i32 : i32 to vector<8x64xi32>
    %35 = arith.addi %29, %34 : vector<8x64xi32>
    %c8_i32_7 = arith.constant 8 : i32
    %36 = vector.broadcast %c8_i32_7 : i32 to vector<8x64xi32>
    %37 = arith.muli %35, %36 : vector<8x64xi32>
    %38 = arith.cmpi slt, %30, %37 : vector<8x64xi32>
    %39 = arith.andi %33, %38 : vector<8x64xi1>
    %40 = arith.extui %39 : vector<8x64xi1> to vector<8x64xi32>
    %41 = arith.sitofp %40 : vector<8x64xi32> to vector<8x64xf32>
    %cst_8 = arith.constant dense<0.000000e+00> : vector<8x256xf32>
    %42 = tpu.matmul %41, %28, %cst_8 {dimension_numbers = #tpu.dot_dimension_numbers<[1], [0], [0], [1], [0, 0, 1, 1], [], []>} : vector<8x64xf32>, vector<64x256xf32>, vector<8x256xf32> -> vector<8x256xf32>
    %c0_9 = arith.constant 0 : index
    %c0_10 = arith.constant 0 : index
    %43 = vector.load %arg3[%c0_9, %c0_10] : memref<8x256xf32, #tpu.memory_space<vmem>>, vector<8x256xf32>
    tpu.vector_store %arg3[%c0_9, %c0_10], %42 {strides = array<i32>} : memref<8x256xf32, #tpu.memory_space<vmem>>, vector<8x256xf32>,
    return
  }
  func.func @transform_0(%arg0: i32) -> (i32, i32) {
    %c0_i32 = arith.constant 0 : i32
    %c0_i32_0 = arith.constant 0 : i32
    return %arg0, %c0_i32 : i32, i32
  }
  func.func @transform_1(%arg0: i32) -> (i32, i32) {
    %c0_i32 = arith.constant 0 : i32
    %c0_i32_0 = arith.constant 0 : i32
    %c0_i32_1 = arith.constant 0 : i32
    return %c0_i32, %c0_i32_0 : i32, i32
  }
  func.func @transform_2(%arg0: i32) -> (i32, i32) {
    %c0_i32 = arith.constant 0 : i32
    %c0_i32_0 = arith.constant 0 : i32
    return %c0_i32, %arg0 : i32, i32
  }
}

module attributes {stable_mosaic.version = 11 : i64} {
  func.func @_tn_kernel_pretransposed(%arg0: i32, %arg1: memref<16x256xf32, #tpu.memory_space<vmem>>, %arg2: memref<88x32xf32, #tpu.memory_space<vmem>>, %arg3: memref<8x256xf32, #tpu.memory_space<vmem>>) attributes {dimension_semantics = [#tpu.dimension_semantics<parallel>], iteration_bounds = array<i64: 2>, scalar_prefetch = 0 : i64, scratch_operands = 0 : i64, tpu.core_type = #tpu.core_type<tc>, window_params = [{transform_indices = @transform_0, window_bounds = array<i64: 16, 256>}, {pipeline_mode = #tpu.pipeline_mode<synchronous>, transform_indices = @transform_1, window_bounds = array<i64: 88, 32>}, {transform_indices = @transform_2, window_bounds = array<i64: 8, 256>}]} {
    %c0 = arith.constant 0 : index
    %c0_0 = arith.constant 0 : index
    %0 = vector.load %arg1[%c0, %c0_0] : memref<16x256xf32, #tpu.memory_space<vmem>>, vector<16x256xf32>
    %c0_1 = arith.constant 0 : index
    %c0_2 = arith.constant 0 : index
    %1 = vector.load %arg2[%c0_1, %c0_2] : memref<88x32xf32, #tpu.memory_space<vmem>>, vector<16x16xf32>
    %c16 = arith.constant 16 : index
    %c0_3 = arith.constant 0 : index
    %2 = vector.load %arg2[%c16, %c0_3] : memref<88x32xf32, #tpu.memory_space<vmem>>, vector<8x32xf32>
    %c24 = arith.constant 24 : index
    %c0_4 = arith.constant 0 : index
    %3 = vector.load %arg2[%c24, %c0_4] : memref<88x32xf32, #tpu.memory_space<vmem>>, vector<64x32xf32>
    %cst = arith.constant dense<0.000000e+00> : vector<16x256xf32>
    %4 = tpu.matmul %1, %0, %cst {dimension_numbers = #tpu.dot_dimension_numbers<[1], [0], [0], [1], [0, 0, 1, 1], [], []>} : vector<16x16xf32>, vector<16x256xf32>, vector<16x256xf32> -> vector<16x256xf32>
    %5 = vector.extract_strided_slice %4 {offsets = [0, 0], sizes = [8, 256], strides = [1, 1]} : vector<16x256xf32> to vector<8x256xf32>
    %6 = vector.extract_strided_slice %4 {offsets = [8, 0], sizes = [8, 256], strides = [1, 1]} : vector<16x256xf32> to vector<8x256xf32>
    %7 = vector.extract_strided_slice %0 {offsets = [4, 0], sizes = [4, 256], strides = [1, 1]} : vector<16x256xf32> to vector<4x256xf32>
    %8 = vector.shape_cast %7 : vector<4x256xf32> to vector<4x1x256xf32>
    %9 = vector.shape_cast %5 : vector<8x256xf32> to vector<1x8x256xf32>
    %10 = vector.broadcast %8 : vector<4x1x256xf32> to vector<4x8x256xf32>
    %11 = vector.broadcast %9 : vector<1x8x256xf32> to vector<4x8x256xf32>
    %12 = arith.mulf %10, %11 : vector<4x8x256xf32>
    %13 = vector.shape_cast %12 : vector<4x8x256xf32> to vector<32x256xf32>
    %cst_5 = arith.constant dense<0.000000e+00> : vector<8x256xf32>
    %14 = tpu.matmul %2, %13, %cst_5 {dimension_numbers = #tpu.dot_dimension_numbers<[1], [0], [0], [1], [0, 0, 1, 1], [], []>} : vector<8x32xf32>, vector<32x256xf32>, vector<8x256xf32> -> vector<8x256xf32>
    %15 = vector.extract_strided_slice %0 {offsets = [8, 0], sizes = [4, 256], strides = [1, 1]} : vector<16x256xf32> to vector<4x256xf32>
    %16 = vector.shape_cast %15 : vector<4x256xf32> to vector<4x1x256xf32>
    %17 = vector.shape_cast %14 : vector<8x256xf32> to vector<1x8x256xf32>
    %18 = vector.broadcast %16 : vector<4x1x256xf32> to vector<4x8x256xf32>
    %19 = vector.broadcast %17 : vector<1x8x256xf32> to vector<4x8x256xf32>
    %20 = arith.mulf %18, %19 : vector<4x8x256xf32>
    %21 = vector.shape_cast %20 : vector<4x8x256xf32> to vector<32x256xf32>
    %cst_6 = arith.constant dense<0.000000e+00> : vector<64x256xf32>
    %22 = tpu.matmul %3, %21, %cst_6 {dimension_numbers = #tpu.dot_dimension_numbers<[1], [0], [0], [1], [0, 0, 1, 1], [], []>} : vector<64x32xf32>, vector<32x256xf32>, vector<64x256xf32> -> vector<64x256xf32>
    %23 = vector.shape_cast %22 : vector<64x256xf32> to vector<8x8x256xf32>
    %24 = vector.shape_cast %6 : vector<8x256xf32> to vector<1x8x256xf32>
    %25 = vector.broadcast %24 : vector<1x8x256xf32> to vector<8x8x256xf32>
    %26 = arith.mulf %23, %25 : vector<8x8x256xf32>
    %27 = vector.shape_cast %26 : vector<8x8x256xf32> to vector<64x256xf32>
    %28 = tpu.iota {dimensions = array<i32: 0>} : vector<8x64xi32>
    %29 = tpu.iota {dimensions = array<i32: 1>} : vector<8x64xi32>
    %c8_i32 = arith.constant 8 : i32
    %30 = vector.broadcast %c8_i32 : i32 to vector<8x64xi32>
    %31 = arith.muli %28, %30 : vector<8x64xi32>
    %32 = arith.cmpi sge, %29, %31 : vector<8x64xi32>
    %c1_i32 = arith.constant 1 : i32
    %33 = vector.broadcast %c1_i32 : i32 to vector<8x64xi32>
    %34 = arith.addi %28, %33 : vector<8x64xi32>
    %c8_i32_7 = arith.constant 8 : i32
    %35 = vector.broadcast %c8_i32_7 : i32 to vector<8x64xi32>
    %36 = arith.muli %34, %35 : vector<8x64xi32>
    %37 = arith.cmpi slt, %29, %36 : vector<8x64xi32>
    %38 = arith.andi %32, %37 : vector<8x64xi1>
    %39 = arith.extui %38 : vector<8x64xi1> to vector<8x64xi32>
    %40 = arith.sitofp %39 : vector<8x64xi32> to vector<8x64xf32>
    %cst_8 = arith.constant dense<0.000000e+00> : vector<8x256xf32>
    %41 = tpu.matmul %40, %27, %cst_8 {dimension_numbers = #tpu.dot_dimension_numbers<[1], [0], [0], [1], [0, 0, 1, 1], [], []>} : vector<8x64xf32>, vector<64x256xf32>, vector<8x256xf32> -> vector<8x256xf32>
    %c0_9 = arith.constant 0 : index
    %c0_10 = arith.constant 0 : index
    %42 = vector.load %arg3[%c0_9, %c0_10] : memref<8x256xf32, #tpu.memory_space<vmem>>, vector<8x256xf32>
    tpu.vector_store %arg3[%c0_9, %c0_10], %41 {strides = array<i32>} : memref<8x256xf32, #tpu.memory_space<vmem>>, vector<8x256xf32>,
    return
  }
  func.func @transform_0(%arg0: i32) -> (i32, i32) {
    %c0_i32 = arith.constant 0 : i32
    %c0_i32_0 = arith.constant 0 : i32
    return %c0_i32, %arg0 : i32, i32
  }
  func.func @transform_1(%arg0: i32) -> (i32, i32) {
    %c0_i32 = arith.constant 0 : i32
    %c0_i32_0 = arith.constant 0 : i32
    %c0_i32_1 = arith.constant 0 : i32
    return %c0_i32, %c0_i32_0 : i32, i32
  }
  func.func @transform_2(%arg0: i32) -> (i32, i32) {
    %c0_i32 = arith.constant 0 : i32
    %c0_i32_0 = arith.constant 0 : i32
    return %c0_i32, %arg0 : i32, i32
  }
}

</mosaic_0001>

<bundles_post_ra>
// kernel: tpu_custom_call.1
= control target key start
LH: loop header
LB: loop body
LE: loop exit
PB: predicated region body
PF: predicated region fallthrough
CT: control target
= control target key end

     0   :  { %7 = vsyncpa [#allocation3], 0  ;;  %s1321_s0 = inlined_call_operand.vmem [shape: f32[300,16], index: 0, kind: input, shape index: {}]   ;;  %s1322_s1 = inlined_call_operand.vmem [shape: f32[88,32], index: 1, kind: input, shape index: {}]   ;;  %s1323_s2 = inlined_call_operand.hbm [shape: f32[8,300], index: 2, kind: output, shape index: {}]  }
   0x1   :  { %9 = vsyncpa [#allocation3 + $0x1], 0  ;;  %s1057_s9 = smov 0   ;;  %s1059_s10 = smov 0  }
   0x2   :  { %s1061_s11 = smov 0   ;;  %s1063_s12 = smov 0  }
   0x3 LB: > { %s1078_s13 = sadd.s32 4294967295, %s1037_s12   ;;  %s907_s14 = sadd.s32 4294967294, %s1037_s12   ;;  %s1037_s12 = sphi %s1063_s12, %s1331_s12   ;;  %s1033_s11 = sphi %s1061_s11, %s1330_s11   ;;  %s1029_s10 = sphi %s1059_s10, %s1329_s10   ;;  %s1025_s9 = sphi %s1057_s9, %s1328_s9  }
   0x4   : > { %s1082_s15 = sadd.s32 1, %s1037_s12   ;;  %s69_s16 = sadd.s32 1, %s1033_s11 }
   0x5   : > { %s66_s17 = ssub.s32 %s1037_s12, %s1082_s15  ;;  %p79_p0 = scmp.ne.s32.totalorder %s1033_s11, %s1029_s10 }
   0x6   : > { %p67_p1 = scmp.eq.s32.totalorder %s66_s17, 0  ;;  %p80_p2 = scmp.eq.s32.totalorder %s1078_s13, 1 }
   0x7   : > { %p85_p3 = scmp.ne.s32.totalorder %s1029_s10, %s1025_s9  ;;  %p86_p4 = scmp.eq.s32.totalorder %s907_s14, 1 }
   0x8   : > { %s1093_s18 = scalar_select %p67_p1, %s1033_s11, %s69_s16  }
   0x9   : > { %p1095_p5 = por %p80_p2, %p79_p0  ;;  %p1099_p6 = por %p86_p4, %p85_p3 }
   0xa   : > { %p910_p7 = scmp.ge.s32.totalorder %s1037_s12, 1  ;;  %p124_p8 = scmp.lt.s32.totalorder %s1037_s12, 3 }
   0xc   : > { %p125_p9 = pnand %p910_p7, %p124_p8 }
   0xd   : > { %s912_s21 = sshll.u32 (!%p125_p9), %s1078_s13, 5  ;;  %s147_s29 = sand.u32 (!%p125_p9), 1, %s1029_s10  }
   0xe   : > { %128 = sbr.rel (%p125_p9) target bundleno = 1029 (0x405), region = 28  ;;  %p155_p10 = scmp.lt.s32.totalorder (!%p125_p9), %s912_s21, 37 }
   0xf   : > { %s911_s30 = sshll.u32 (!%p125_p9), %s147_s29, 4  ;;  %s1274_s4 = scalar_lea.sflag (!%p125_p9), [#allocation3], %s147_s29 }
  0x10   : > { %s149_s3 = scalar_lea.vmem (!%p125_p9), [#allocation2], %s911_s30 }
  0x13   : > { %s1333_s21 = smov (!%p155_p10, %s912_s21), 37  ;;  %v1039_v6 = vmov 0.0   ;;  %v1040_v33 = vmov 1966171168   ;;  %v366_v35 = vlaneseq  ;;  %v265_v45 = vld [vmem:[%s1322_s1] sm:$0xff]  ;;  %vm276_vm0 = vcmask 130048  }
  0x14   : > { %s913_s22 = sshll.u32 %s1333_s21, 3  ;;  %347 = vmatprep.mubr.f32.mxu1 %v1039_v6  ;;  %673 = vmatprep.mubr.f32.mxu0 %v1039_v6  ;;  %v364_v34 = vunpack.c.l.s4 %v1040_v33  ;;  %v266_v62 = vld [vmem:[%s1322_s1 + $0x8] sm:$0xff]  ;;  %vm435_vm1 = vcmask 261120   ;;  %vm750_vm5 = vcmask 523264   ;;  %s928_s5 = sshll.u32 (%p1095_p5), %s1078_s13, 1 }
  0x15   : > { %s1109_s25 = scalar_lea.vmem %s1321_s0, %s913_s22  ;;  %v1146_v39 = vshrl.u32 %v366_v35, 7  ;;  %s836_s6 = ssub.s32 (%p1095_p5), 3, %s928_s5 }
  0x16   : > { %v185_v0 = vld [vmem:[%s1109_s25 + $0x80] sm:$0xff]  ;;  %v186_v2 = vld [vmem:[%s1109_s25 + $0x88] sm:$0xff]  ;;  %v187_v4 = vld [vmem:[%s1109_s25 + $0x90] sm:$0xff]  ;;  %v365_v38 = vunpack.c.0.s8 %v364_v34  ;;  %p837_p11 = scmp.lt.s32.totalorder (%p1095_p5), %s836_s6, 2 }
  0x17   : > { %v169_v1 = vld [vmem:[%s1109_s25] sm:$0xff]  ;;  %233 = vxpose.xlu0.b32.start [1/16] (narrow) %v185_v0, 16  ;;  %v170_v3 = vld [vmem:[%s1109_s25 + $0x8] sm:$0xff]  ;;  %v171_v5 = vld [vmem:[%s1109_s25 + $0x10] sm:$0xff]  ;;  %v1156_v49 = vsub.s32 0, %v1146_v39  ;;  %v1159_v50 = vsub.s32 1, %v1146_v39 }
  0x18   : > { %201 = vxpose.xlu1.b32.start [1/16] (narrow) %v169_v1, 16  ;;  %v188_v7 = vld [vmem:[%s1109_s25 + $0x98] sm:$0xff]  ;;  %v189_v9 = vld [vmem:[%s1109_s25 + $0xa0] sm:$0xff]  ;;  %v190_v11 = vld [vmem:[%s1109_s25 + $0xa8] sm:$0xff]  ;;  %v368_v43 = vsub.s32 %v365_v38, %v1146_v39 }
  0x19   : > { %v172_v8 = vld [vmem:[%s1109_s25 + $0x18] sm:$0xff]  ;;  %v173_v10 = vld [vmem:[%s1109_s25 + $0x20] sm:$0xff]  ;;  %v174_v12 = vld [vmem:[%s1109_s25 + $0x28] sm:$0xff] }
  0x1a   : > { %v191_v13 = vld [vmem:[%s1109_s25 + $0xb0] sm:$0xff]  ;;  %v192_v15 = vld [vmem:[%s1109_s25 + $0xb8] sm:$0xff]  ;;  %v193_v17 = vld [vmem:[%s1109_s25 + $0xc0] sm:$0xff] }
  0x1b   : > { %234 = vxpose.xlu0.b32.cont [2/16] (narrow) %v186_v2, 16  ;;  %v175_v14 = vld [vmem:[%s1109_s25 + $0x30] sm:$0xff]  ;;  %v176_v16 = vld [vmem:[%s1109_s25 + $0x38] sm:$0xff]  ;;  %v177_v18 = vld [vmem:[%s1109_s25 + $0x40] sm:$0xff] }
  0x1c   : > { %202 = vxpose.xlu1.b32.cont [2/16] (narrow) %v170_v3, 16  ;;  %v194_v19 = vld [vmem:[%s1109_s25 + $0xc8] sm:$0xff]  ;;  %v195_v21 = vld [vmem:[%s1109_s25 + $0xd0] sm:$0xff]  ;;  %v196_v23 = vld [vmem:[%s1109_s25 + $0xd8] sm:$0xff] }
  0x1d   : > { %v178_v20 = vld [vmem:[%s1109_s25 + $0x48] sm:$0xff]  ;;  %v179_v22 = vld [vmem:[%s1109_s25 + $0x50] sm:$0xff]  ;;  %v180_v24 = vld [vmem:[%s1109_s25 + $0x58] sm:$0xff] }
  0x1e   : > { %v197_v25 = vld [vmem:[%s1109_s25 + $0xe0] sm:$0xff]  ;;  %v198_v27 = vld [vmem:[%s1109_s25 + $0xe8] sm:$0xff]  ;;  %v199_v29 = vld [vmem:[%s1109_s25 + $0xf0] sm:$0xff] }
  0x1f   : > { %235 = vxpose.xlu0.b32.cont [3/16] (narrow) %v187_v4, 16  ;;  %v181_v26 = vld [vmem:[%s1109_s25 + $0x60] sm:$0xff]  ;;  %v182_v28 = vld [vmem:[%s1109_s25 + $0x68] sm:$0xff]  ;;  %v183_v30 = vld [vmem:[%s1109_s25 + $0x70] sm:$0xff] }
  0x20   : > { %203 = vxpose.xlu1.b32.cont [3/16] (narrow) %v171_v5, 16  ;;  %v200_v31 = vld [vmem:[%s1109_s25 + $0xf8] sm:$0xff] }
  0x21   : > { %v184_v32 = vld [vmem:[%s1109_s25 + $0x78] sm:$0xff] }
  0x22   : > { %v268_v38 = vld [vmem:[%s1322_s1 + $0x18] sm:$0xff] }
  0x23   : > { %236 = vxpose.xlu0.b32.cont [4/16] (narrow) %v188_v7, 16 }
  0x24   : > { %204 = vxpose.xlu1.b32.cont [4/16] (narrow) %v172_v8, 16 }
  0x27   : > { %237 = vxpose.xlu0.b32.cont [5/16] (narrow) %v189_v9, 16 }
  0x28   : > { %205 = vxpose.xlu1.b32.cont [5/16] (narrow) %v173_v10, 16 }
  0x2b   : > { %238 = vxpose.xlu0.b32.cont [6/16] (narrow) %v190_v11, 16 }
  0x2c   : > { %206 = vxpose.xlu1.b32.cont [6/16] (narrow) %v174_v12, 16 }
  0x2f   : > { %239 = vxpose.xlu0.b32.cont [7/16] (narrow) %v191_v13, 16 }
  0x30   : > { %207 = vxpose.xlu1.b32.cont [7/16] (narrow) %v175_v14, 16 }
  0x33   : > { %240 = vxpose.xlu0.b32.cont [8/16] (narrow) %v192_v15, 16 }
  0x34   : > { %208 = vxpose.xlu1.b32.cont [8/16] (narrow) %v176_v16, 16 }
  0x37   : > { %241 = vxpose.xlu0.b32.cont [9/16] (narrow) %v193_v17, 16 }
  0x38   : > { %209 = vxpose.xlu1.b32.cont [9/16] (narrow) %v177_v18, 16 }
  0x3b   : > { %242 = vxpose.xlu0.b32.cont [10/16] (narrow) %v194_v19, 16 }
  0x3c   : > { %210 = vxpose.xlu1.b32.cont [10/16] (narrow) %v178_v20, 16 }
  0x3f   : > { %243 = vxpose.xlu0.b32.cont [11/16] (narrow) %v195_v21, 16 }
  0x40   : > { %211 = vxpose.xlu1.b32.cont [11/16] (narrow) %v179_v22, 16 }
  0x43   : > { %244 = vxpose.xlu0.b32.cont [12/16] (narrow) %v196_v23, 16 }
  0x44   : > { %212 = vxpose.xlu1.b32.cont [12/16] (narrow) %v180_v24, 16  ;;  %v267_v24 = vld [vmem:[%s1322_s1 + $0x10] sm:$0xff] }
  0x47   : > { %245 = vxpose.xlu0.b32.cont [13/16] (narrow) %v197_v25, 16 }
  0x48   : > { %213 = vxpose.xlu1.b32.cont [13/16] (narrow) %v181_v26, 16 }
  0x4b   : > { %246 = vxpose.xlu0.b32.cont [14/16] (narrow) %v198_v27, 16 }
  0x4c   : > { %214 = vxpose.xlu1.b32.cont [14/16] (narrow) %v182_v28, 16 }
  0x4f   : > { %247 = vxpose.xlu0.b32.cont [15/16] (narrow) %v199_v29, 16 }
  0x50   : > { %215 = vxpose.xlu1.b32.cont [15/16] (narrow) %v183_v30, 16 }
  0x53   : > { %248 = vxpose.xlu0.b32.end [16/16] (narrow) %v200_v31, 16 }
  0x54   : > { %216 = vxpose.xlu1.b32.end [16/16] (narrow) %v184_v32, 16 }
  0x93   : > { %v249_v36 = vpop.trf.xlu0 }
  0x94   : > { %v217_v37 = vpop.trf.xlu1 }
  0x95   : > { %v362_v40 = vcombine.high %v217_v37, %v249_v36 }
  0x97   : > { %v250_v41 = vpop.trf.xlu0  ;;  %v369_v63 = vrot.slane %v362_v40, %v368_v43  ;;  %v269_v40 = vld [vmem:[%s1322_s1 + $0x20] sm:$0xff] }
  0x98   : > { %v218_v42 = vpop.trf.xlu1  ;;  %311 = vmatprep.subr.mxu1 %v250_v41 }
  0x99   : > { %v512_v44 = vcombine.low %v218_v42, %v250_v41  ;;  %312 = vmatpush1.msra.mxu1 %v218_v42  ;;  %v370_v0 = vcombine.high %v369_v63, %v369_v63  ;;  %v377_v2 = vrot.slane %v369_v63, %v368_v43  ;;  %v270_v41 = vld [vmem:[%s1322_s1 + $0x28] sm:$0xff]  ;;  %v271_v42 = vld [vmem:[%s1322_s1 + $0x30] sm:$0xff] }
  0x9a   : > { %313 = vmatprep.subr.mxu1 %v249_v36 }
  0x9b   : > { %v519_v46 = vrot.slane %v512_v44, %v368_v43  ;;  %314 = vmatpush1.msra.mxu1 %v217_v37  ;;  %v384_v1 = vrot.slane %v370_v0, %v368_v43  ;;  %v385_v4 = vcombine.high %v377_v2, %v377_v2  ;;  %v394_v19 = vrot.slane %v377_v2, %v1159_v50  ;;  %v273_v44 = vld [vmem:[%s1322_s1 + $0x40] sm:$0xff] }
  0x9c   : > { %914 = vmatmul.mubr.msk.f32.vlgmr.msra.gmra.mxu1 %vm276_vm0, %v265_v45  ;;  %v390_v20 = vrot.slane %v377_v2, %v1156_v49  ;;  %v274_v45 = vld [vmem:[%s1322_s1 + $0x48] sm:$0xff] }
  0x9d   : > { %v520_v47 = vcombine.high %v519_v46, %v519_v46  ;;  %v1152_v48 = vrot.slane %v519_v46, %v368_v43  ;;  %353 = vmatprep.mubr.f32.mxu1 %v1039_v6  ;;  %v386_v3 = vcombine.high %v384_v1, %v384_v1  ;;  %v410_v11 = vrot.slane %v385_v4, %v1159_v50  ;;  %v275_v46 = vld [vmem:[%s1322_s1 + $0x50] sm:$0xff] }
  0x9e   : > { %v406_v12 = vrot.slane %v385_v4, %v1156_v49  ;;  %v402_v15 = vrot.slane %v384_v1, %v1159_v50  ;;  %v398_v16 = vrot.slane %v384_v1, %v1156_v49  ;;  %v744_v1 = vadd.s32 1, %v1146_v39 }
  0x9f   : > { %v1162_v51 = vrot.slane %v520_v47, %v368_v43  ;;  %v535_v52 = vcombine.high %v1152_v48, %v1152_v48  ;;  %v544_v53 = vrot.slane %v1152_v48, %v1159_v50  ;;  %v540_v54 = vrot.slane %v1152_v48, %v1156_v49  ;;  %v272_v43 = vld [vmem:[%s1322_s1 + $0x38] sm:$0xff] }
  0xa0   : > { %915 = vmatmul.mubr.msk.f32.gmra.mxu1 %vm276_vm0, %v266_v62  ;;  %v418_v7 = vrot.slane %v386_v3, %v1159_v50  ;;  %v414_v8 = vrot.slane %v386_v3, %v1156_v49 }
  0xa1   : > { %v536_v55 = vcombine.high %v1162_v51, %v1162_v51  ;;  %v560_v56 = vrot.slane %v535_v52, %v1159_v50  ;;  %v556_v57 = vrot.slane %v535_v52, %v1156_v49  ;;  %v552_v58 = vrot.slane %v1162_v51, %v1159_v50  ;;  %503 = vmatprep.mubr.f32.mxu1 %v1039_v6 }
  0xa2   : > { %v548_v59 = vrot.slane %v1162_v51, %v1156_v49 }
  0xa3   : > { %v568_v60 = vrot.slane %v536_v55, %v1159_v50  ;;  %v564_v61 = vrot.slane %v536_v55, %v1156_v49 }
 0x15c   : > { %v349_v5 = vpop.f32.mrf.mxu1 }
 0x15d   : > { %v433_v13 = vmul.f32 %v414_v8, %v349_v5  ;;  %v431_v17 = vmul.f32 %v406_v12, %v349_v5  ;;  %v429_v21 = vmul.f32 %v398_v16, %v349_v5  ;;  %v427_v23 = vmul.f32 %v390_v20, %v349_v5 }
 0x15e   : > { %v351_v9 = vpop.f32.mrf.mxu1  ;;  %v742_v8 = vmul.u32 8, %v1146_v39 }
 0x15f   : > { %v434_v10 = vmul.f32 %v418_v7, %v351_v9  ;;  %v432_v14 = vmul.f32 %v410_v11, %v351_v9  ;;  %v430_v18 = vmul.f32 %v402_v15, %v351_v9  ;;  %v428_v22 = vmul.f32 %v394_v19, %v351_v9 }
 0x160   : > { %v1198_v25 = vpop.f32.mrf.mxu1  ;;  %v741_v7 = vand.u32 127, %v366_v35  ;;  %v745_v9 = vmul.u32 8, %v744_v1 }
 0x161   : > { %463 = vmatprep.subr.mxu1 %v434_v10 }
 0x162   : > { %464 = vmatpush1.msra.mxu1 %v433_v13  ;;  %v1200_v26 = vpop.f32.mrf.mxu1  ;;  %vm1260_vm2 = vcmp.ge.s32.totalorder %v741_v7, %v742_v8  ;;  %vm746_vm3 = vcmp.lt.s32.totalorder %v741_v7, %v745_v9 }
 0x163   : > { %465 = vmatprep.subr.mxu1 %v432_v14  ;;  %vm747_vm4 = vmand %vm1260_vm2, %vm746_vm3 }
 0x164   : > { %466 = vmatpush1.msra.mxu1 %v431_v17  ;;  %v925_v19 = vsel %vm747_vm4, 1.0, %v1039_v6 }
 0x165   : > { %467 = vmatprep.subr.mxu1 %v430_v18 }
 0x166   : > { %468 = vmatpush1.msra.mxu1 %v429_v21 }
 0x167   : > { %469 = vmatprep.subr.mxu1 %v428_v22 }
 0x168   : > { %470 = vmatpush1.msra.mxu1 %v427_v23 }
 0x169   : > { %916 = vmatmul.mubr.msk.f32.vlgmr.msra.gmra.mxu1 %vm435_vm1, %v267_v24 }
 0x16a   : > { %818 = vmatprep.mubr.f32.mxu1 %v1039_v6 }
 0x229   : > { %v505_v27 = vpop.f32.mrf.mxu1 }
 0x22a   : > { %v583_v30 = vmul.f32 %v564_v61, %v505_v27  ;;  %v581_v32 = vmul.f32 %v556_v57, %v505_v27  ;;  %v579_v34 = vmul.f32 %v548_v59, %v505_v27  ;;  %v577_v37 = vmul.f32 %v540_v54, %v505_v27 }
 0x22b   : > { %v507_v28 = vpop.f32.mrf.mxu1 }
 0x22c   : > { %v584_v29 = vmul.f32 %v568_v60, %v507_v28  ;;  %v582_v31 = vmul.f32 %v560_v56, %v507_v28  ;;  %v580_v33 = vmul.f32 %v552_v58, %v507_v28  ;;  %v578_v36 = vmul.f32 %v544_v53, %v507_v28 }
 0x22e   : > { %633 = vmatprep.subr.mxu0 %v584_v29 }
 0x22f   : > { %634 = vmatpush1.msra.mxu0 %v583_v30 }
 0x230   : > { %635 = vmatprep.subr.mxu0 %v582_v31 }
 0x231   : > { %636 = vmatpush1.msra.mxu0 %v581_v32 }
 0x232   : > { %637 = vmatprep.subr.mxu0 %v580_v33 }
 0x233   : > { %638 = vmatpush1.msra.mxu0 %v579_v34 }
 0x234   : > { %639 = vmatprep.subr.mxu0 %v578_v36 }
 0x235   : > { %640 = vmatpush1.msra.mxu0 %v577_v37 }
 0x236   : > { %917 = vmatmul.mubr.msk.f32.vlgmr.msra.gmra.mxu0 %vm435_vm1, %v268_v38 }
 0x237   : > { %679 = vmatprep.mubr.f32.mxu0 %v1039_v6 }
 0x23a   : > { %918 = vmatmul.mubr.msk.f32.gmra.mxu0 %vm435_vm1, %v269_v40 }
 0x23b   : > { %685 = vmatprep.mubr.f32.mxu0 %v1039_v6 }
 0x23e   : > { %919 = vmatmul.mubr.msk.f32.gmra.mxu0 %vm435_vm1, %v270_v41 }
 0x23f   : > { %691 = vmatprep.mubr.f32.mxu0 %v1039_v6 }
 0x242   : > { %920 = vmatmul.mubr.msk.f32.gmra.mxu0 %vm435_vm1, %v271_v42 }
 0x243   : > { %697 = vmatprep.mubr.f32.mxu0 %v1039_v6 }
 0x246   : > { %921 = vmatmul.mubr.msk.f32.gmra.mxu0 %vm435_vm1, %v272_v43 }
 0x247   : > { %703 = vmatprep.mubr.f32.mxu0 %v1039_v6 }
 0x24a   : > { %922 = vmatmul.mubr.msk.f32.gmra.mxu0 %vm435_vm1, %v273_v44 }
 0x24b   : > { %709 = vmatprep.mubr.f32.mxu0 %v1039_v6 }
 0x24e   : > { %923 = vmatmul.mubr.msk.f32.gmra.mxu0 %vm435_vm1, %v274_v45 }
 0x24f   : > { %715 = vmatprep.mubr.f32.mxu0 %v1039_v6 }
 0x252   : > { %924 = vmatmul.mubr.msk.f32.gmra.mxu0 %vm435_vm1, %v275_v46 }
 0x2f6   : > { %v675_v47 = vpop.f32.mrf.mxu0 }
 0x2f7   : > { %v722_v18 = vmul.f32 %v675_v47, %v1198_v25 }
 0x2f8   : > { %v677_v48 = vpop.f32.mrf.mxu0 }
 0x2f9   : > { %v723_v17 = vmul.f32 %v677_v48, %v1200_v26 }
 0x2fa   : > { %v681_v49 = vpop.f32.mrf.mxu0 }
 0x2fb   : > { %v724_v16 = vmul.f32 %v681_v49, %v1198_v25 }
 0x2fc   : > { %v683_v50 = vpop.f32.mrf.mxu0 }
 0x2fd   : > { %v725_v15 = vmul.f32 %v683_v50, %v1200_v26 }
 0x2fe   : > { %v687_v51 = vpop.f32.mrf.mxu0 }
 0x2ff   : > { %v726_v39 = vmul.f32 %v687_v51, %v1198_v25 }
 0x300   : > { %v689_v52 = vpop.f32.mrf.mxu0 }
 0x301   : > { %v727_v35 = vmul.f32 %v689_v52, %v1200_v26 }
 0x302   : > { %v693_v53 = vpop.f32.mrf.mxu0 }
 0x303   : > { %v728_v13 = vmul.f32 %v693_v53, %v1198_v25 }
 0x304   : > { %v695_v54 = vpop.f32.mrf.mxu0 }
 0x305   : > { %v729_v12 = vmul.f32 %v695_v54, %v1200_v26 }
 0x306   : > { %v699_v55 = vpop.f32.mrf.mxu0 }
 0x307   : > { %v730_v11 = vmul.f32 %v699_v55, %v1198_v25 }
 0x308   : > { %v701_v56 = vpop.f32.mrf.mxu0 }
 0x309   : > { %v731_v10 = vmul.f32 %v701_v56, %v1200_v26 }
 0x30a   : > { %v705_v57 = vpop.f32.mrf.mxu0 }
 0x30b   : > { %v732_v5 = vmul.f32 %v705_v57, %v1198_v25 }
 0x30c   : > { %v707_v58 = vpop.f32.mrf.mxu0 }
 0x30d   : > { %v733_v4 = vmul.f32 %v707_v58, %v1200_v26 }
 0x30e   : > { %v711_v59 = vpop.f32.mrf.mxu0 }
 0x30f   : > { %v734_v3 = vmul.f32 %v711_v59, %v1198_v25 }
 0x310   : > { %v713_v60 = vpop.f32.mrf.mxu0 }
 0x311   : > { %v735_v2 = vmul.f32 %v713_v60, %v1200_v26 }
 0x312   : > { %v717_v61 = vpop.f32.mrf.mxu0 }
 0x313   : > { %v736_v0 = vmul.f32 %v717_v61, %v1198_v25 }
 0x314   : > { %v719_v62 = vpop.f32.mrf.mxu0 }
 0x315   : > { %v737_v63 = vmul.f32 %v719_v62, %v1200_v26 }
 0x317   : > { %770 = vmatprep.subr.mxu1 %v737_v63 }
 0x318   : > { %771 = vmatpush1.msra.mxu1 %v736_v0 }
 0x319   : > { %772 = vmatprep.subr.mxu1 %v735_v2 }
 0x31a   : > { %773 = vmatpush1.msra.mxu1 %v734_v3 }
 0x31b   : > { %774 = vmatprep.subr.mxu1 %v733_v4 }
 0x31c   : > { %775 = vmatpush1.msra.mxu1 %v732_v5 }
 0x31d   : > { %776 = vmatprep.subr.mxu1 %v731_v10 }
 0x31e   : > { %777 = vmatpush1.msra.mxu1 %v730_v11 }
 0x31f   : > { %778 = vmatprep.subr.mxu1 %v729_v12 }
 0x320   : > { %779 = vmatpush1.msra.mxu1 %v728_v13 }
 0x321   : > { %780 = vmatprep.subr.mxu1 %v727_v35 }
 0x322   : > { %781 = vmatpush1.msra.mxu1 %v726_v39 }
 0x323   : > { %782 = vmatprep.subr.mxu1 %v725_v15 }
 0x324   : > { %783 = vmatpush1.msra.mxu1 %v724_v16 }
 0x325   : > { %784 = vmatprep.subr.mxu1 %v723_v17 }
 0x326   : > { %785 = vmatpush1.msra.mxu1 %v722_v18 }
 0x327   : > { %926 = vmatmul.mubr.msk.f32.vlgmr.msra.gmra.mxu1 %vm750_vm5, %v925_v19 }
 0x3e6   : > { %834 = sbr.rel (!%p1095_p5) target bundleno = 1029 (0x405), region = 32 }
 0x3e7   : > { %v820_v20 = vpop.f32.mrf.mxu1 }
 0x3e8   : > { %825 = vst [vmem:[%s149_s3] sm:$0xff] %v820_v20 }
 0x3e9   : > { %v822_v21 = vpop.f32.mrf.mxu1 }
 0x3ea   : > { %826 = vst [vmem:[%s149_s3 + $0x8] sm:$0xff] %v822_v21 }
 0x3eb   : > { %s1335_s6 = smov (!%p837_p11, %s836_s6), 2 }
 0x3ec   : > { %s1279_s7 = sshll.u32 %s1335_s6, 7 }
 0x3ed   : > { %s841_s8 = ssub.s32 256, %s1279_s7 }
 0x3ee   : > { %842 = vsyncadd %s1274_s4, %s841_s8  ;;  %p930_p12 = scmp.ne.s32.totalorder %s1279_s7, 0  ;;  %s936_s14 = sshll.u32 %s1078_s13, 8 }
 0x3ef   : > { %s845_s17 = scalar_lea.hbm %s1323_s2, %s936_s14  ;;  %s848_s21 = sshll.u32 %s149_s3, 4  ;;  %s849_s21 = int_to_ptr.vmem [resolvable:$true] %s848_s21 }
 0x3f0   : > { %s977_s22 = scalar_lea.vmem %s849_s21, %s1279_s7  ;;  %s1041_s23 = smov [#allocation2]  }
 0x3f1   : > { %p978_p13 = scmp.ne.s32.totalorder %s849_s21, %s977_s22  ;;  %s981_s24 = sshll.u32 %s1041_s23, 4  ;;  %s982_s24 = int_to_ptr.vmem [resolvable:$false] %s981_s24 }
 0x3f2   : > { %s983_s25 = scalar_lea.vmem %s982_s24, 512  ;;  %p984_p2 = scmp.lt.s32.totalorder %s849_s21, %s982_s24 }
 0x3f3   : > { %p979_p0 = pnand %p978_p13, %p930_p12  ;;  %p985_p3 = scmp.lt.s32.totalorder %s983_s25, %s977_s22 }
 0x3f5   : > { %p980_p1 = pneg %p979_p0  ;;  %p986_p4 = por %p985_p3, %p984_p2 }
 0x3f7   : > { %p987_p5 = pnand %p986_p4, %p980_p1 }
 0x3f9   : > { %990 = shalt.err (!%p987_p5)
}
 0x3fa   : > { %s991_s13 = scalar_lea.hbm %s845_s17, %s1279_s7  ;;  %s995_s28 = scalar_lea.hbm %s1323_s2, 384 }
 0x3fb   : > { %p992_p7 = scmp.ne.s32.totalorder %s845_s17, %s991_s13  ;;  %p996_p10 = scmp.lt.s32.totalorder %s845_s17, %s1323_s2 }
 0x3fc   : > { %p997_p11 = scmp.lt.s32.totalorder %s995_s28, %s991_s13 }
 0x3fd   : > { %p993_p8 = pnand %p992_p7, %p930_p12 }
 0x3fe   : > { %p998_p13 = por %p997_p11, %p996_p10 }
 0x3ff   : > { %p994_p9 = pneg %p993_p8 }
 0x401   : > { %p999_p0 = pnand %p998_p13, %p994_p9 }
 0x403   : > { %1002 = shalt.err (!%p999_p0)
}
 0x404   : > { %851 = dma.vmem_to_hbm [thread:$0]  (%p930_p12), %s849_s21, %s1279_s7, %s845_s17, %s1274_s4  }
 0x405 PF: > { %p942_p1 = scmp.ge.s32.totalorder %s1037_s12, 2  ;;  %s860_s3 = sand.u32 1, %s1025_s9  }
 0x406   : > { %s861_s5 = scalar_lea.sflag [#allocation3], %s860_s3 }
 0x407   : > { %p939_p2 = pnand %p942_p1, %p1099_p6 }
 0x409   : > { %p940_p3 = pneg %p939_p2 }
 0x40b   : > { %1020 = dma.done.wait (%p940_p3), %s861_s5, 256  }
 0x40c   : > { %1022 = vsyncadd (%p940_p3), %s861_s5, 4294967040  ;;  %p12_p4 = scmp.ge.s32.totalorder %s1082_s15, 4   ;;  %s1328_s9 = smov %s1029_s10 }
 0x40d   : > { %s1329_s10 = smov %s1033_s11  ;;  %s1330_s11 = smov %s1093_s18 }
 0x40e   : > { %s1331_s12 = smov %s1082_s15  ;;  %14 = sbr.rel (!%p12_p4) target bundleno = 3 (0x3), region = 63 }
 0x413   :  { %866 = vsyncpa [#allocation3], 1 }
 0x414   :  { %868 = vsyncpa [#allocation3 + $0x1], 1 }

// kernel: tpu_custom_call.1
= control target key start
LH: loop header
LB: loop body
LE: loop exit
PB: predicated region body
PF: predicated region fallthrough
CT: control target
= control target key end

     0   :  { %7 = vsyncpa [#allocation4], 0  ;;  %s2253_s0 = inlined_call_operand.vmem [shape: f32[16,300], index: 0, kind: input, shape index: {}]   ;;  %s2254_s1 = inlined_call_operand.vmem [shape: f32[88,32], index: 1, kind: input, shape index: {}]   ;;  %s2255_s2 = inlined_call_operand.hbm [shape: f32[8,300], index: 2, kind: output, shape index: {}]  }
   0x1   :  { %9 = vsyncpa [#allocation4 + $0x1], 0  ;;  %s1750_s9 = smov 0   ;;  %s1752_s10 = smov 0  }
   0x2   :  { %s1754_s11 = smov 0   ;;  %s1756_s12 = smov 0  }
   0x3 LB: > { %s1771_s13 = sadd.s32 4294967295, %s1664_s12   ;;  %s1305_s14 = sadd.s32 4294967294, %s1664_s12   ;;  %s1664_s12 = sphi %s1756_s12, %s2273_s12   ;;  %s1660_s11 = sphi %s1754_s11, %s2272_s11   ;;  %s1656_s10 = sphi %s1752_s10, %s2271_s10   ;;  %s1652_s9 = sphi %s1750_s9, %s2270_s9  }
   0x4   : > { %s1775_s15 = sadd.s32 1, %s1664_s12   ;;  %s22_s16 = sadd.s32 1, %s1660_s11 }
   0x5   : > { %s19_s17 = ssub.s32 %s1664_s12, %s1775_s15  ;;  %p29_p0 = scmp.ne.s32.totalorder %s1660_s11, %s1656_s10 }
   0x6   : > { %p20_p1 = scmp.eq.s32.totalorder %s19_s17, 0  ;;  %p30_p2 = scmp.eq.s32.totalorder %s1664_s12, 0 }
   0x7   : > { %p80_p3 = scmp.eq.s32.totalorder %s1771_s13, 1  ;;  %p85_p4 = scmp.ne.s32.totalorder %s1656_s10, %s1652_s9 }
   0x8   : > { %s1787_s18 = scalar_select %p20_p1, %s1660_s11, %s22_s16  }
   0x9   : > { %p31_p5 = por %p30_p2, %p29_p0  ;;  %p1789_p6 = por %p80_p3, %p29_p0 }
   0xa   : > { %p86_p7 = scmp.eq.s32.totalorder %s1305_s14, 1  ;;  %p1307_p9 = scmp.ge.s32.totalorder %s1664_s12, 2 }
   0xc   : > { %p1793_p8 = por %p86_p7, %p85_p4  ;;  %105 = sbr.rel (%p1307_p9) target bundleno = 140 (0x8c), region = 20 }
  0x11   : > { %108 = sbr.rel (!%p31_p5) target bundleno = 140 (0x8c), region = 24  ;;  %s110_s21 = sand.u32 (%p31_p5), 1, %s1660_s11  }
  0x12   : > { %s1309_s22 = sshll.u32 (%p31_p5), %s1664_s12, 1  ;;  %s1308_s23 = sshll.u32 (%p31_p5), %s110_s21, 5 }
  0x13   : > { %s114_s24 = ssub.s32 (%p31_p5), 3, %s1309_s22  ;;  %s1362_s25 = sshll.u32 (%p31_p5), %s1664_s12, 4 }
  0x14   : > { %p115_p10 = scmp.lt.s32.totalorder (%p31_p5), %s114_s24, 2  ;;  %s1806_s28 = scalar_lea.vmem (%p31_p5), %s2253_s0, %s1362_s25  }
  0x15   : > { %s1810_s3 = scalar_lea.vmem (%p31_p5), [#allocation2], %s1308_s23  }
  0x16   : > { %s2275_s24 = smov (!%p115_p10, %s114_s24), 2 }
  0x17   : > { %s1310_s29 = sshll.u32 %s2275_s24, 8  ;;  %s1808_s30 = sshll.u32 %s2275_s24, 3 }
  0x18   : > { %p1314_p11 = scmp.eq.s32.totalorder %s1310_s29, 0 }
  0x19   : > { %p125_p12 = scmp.lt.u32.totalorder (!%p1314_p11), %s1808_s30, 8 }
  0x1a   : > { %124 = sbr.rel (%p1314_p11) target bundleno = 140 (0x8c), region = 28 }
  0x1f   : > { %128 = sbr.rel (%p125_p12) target bundleno = 131 (0x83), region = 32  ;;  %s1814_s4 = sand.u32 (!%p125_p12), 7, %s1808_s30  }
  0x20   : > { %p147_p13 = scmp.eq.s32.totalorder (!%p125_p12), %s1814_s4, 0  ;;  %p1315_p0 = scmp.ne.s32.totalorder (!%p125_p12), %s1814_s4, 0 }
  0x24   : > { %150 = sbr.rel (%p1315_p0) target bundleno = 81 (0x51), region = 47  ;;  %s151_s5 = sshrl.u32 (!%p1315_p0), %s1808_s30, 3 }
  0x25   : > { %s1821_s6 = sshrl.u32 (!%p1315_p0), %s151_s5, 5 }
  0x26   : > { %p1316_p1 = scmp.le.s32.totalorder (!%p1315_p0), %s1821_s6, 0 }
  0x29   : > { %1233 = sbr.rel (%p1316_p1) target bundleno = 65 (0x41), region = 146  ;;  %s2258_s7 = smov (!%p1316_p1), %s1810_s3 }
  0x2a   : > { %s2259_s8 = smov (!%p1316_p1), %s1806_s28  ;;  %s1830_s14 = smov (!%p1316_p1), 0  }
  0x2b   : > { %s1832_s16 = smov (!%p1316_p1), 0  }
  0x2e LB: >> { %v170_v0 = vld [vmem:[%s1672_s8 + $0x18] sm:$0xff]  ;;  %v172_v1 = vld [vmem:[%s1672_s8 + $0x20] sm:$0xff]  ;;  %v174_v2 = vld [vmem:[%s1672_s8 + $0x28] sm:$0xff]  ;;  %s292_s17 = sadd.s32 1, %s1676_s14  ;;  %s158_s16 = sadd.s32 1, %s1680_s16   ;;  %s1680_s16 = sphi %s1832_s16, %s158_s16   ;;  %s1676_s14 = sphi %s1830_s14, %s2262_s14   ;;  %s1672_s8 = sphi %s2259_s8, %s2261_s8   ;;  %s1668_s7 = sphi %s2258_s7, %s2260_s7  }
  0x2f   : >> { %v176_v3 = vld [vmem:[%s1672_s8 + $0x30] sm:$0xff]  ;;  %v178_v4 = vld [vmem:[%s1672_s8 + $0x38] sm:$0xff]  ;;  %v180_v5 = vld [vmem:[%s1672_s8 + $0x40] sm:$0xff]  ;;  %229 = vst [vmem:[%s1668_s7 + $0x10] sm:$0xff] %v170_v0  ;;  %p293_p2 = scmp.ge.s32.totalorder %s292_s17, %s1821_s6  ;;  %p157_p3 = scmp.ge.s32.totalorder %s158_s16, %s1821_s6 }
  0x30   : >> { %231 = vst [vmem:[%s1668_s7 + $0x18] sm:$0xff] %v172_v1  ;;  %233 = vst [vmem:[%s1668_s7 + $0x20] sm:$0xff] %v174_v2  ;;  %v182_v6 = vld [vmem:[%s1672_s8 + $0x48] sm:$0xff]  ;;  %v184_v7 = vld [vmem:[%s1672_s8 + $0x50] sm:$0xff] }
  0x31   : >> { %v186_v8 = vld [vmem:[%s1672_s8 + $0x58] sm:$0xff]  ;;  %235 = vst [vmem:[%s1668_s7 + $0x28] sm:$0xff] %v176_v3  ;;  %237 = vst [vmem:[%s1668_s7 + $0x30] sm:$0xff] %v178_v4  ;;  %v188_v9 = vld [vmem:[%s1672_s8 + $0x60] sm:$0xff]  ;;  %s2277_s17 = smov (%p293_p2, %s292_s17), 0 }
  0x32   : >> { %239 = vst [vmem:[%s1668_s7 + $0x38] sm:$0xff] %v180_v5  ;;  %v190_v10 = vld [vmem:[%s1672_s8 + $0x68] sm:$0xff]  ;;  %v192_v11 = vld [vmem:[%s1672_s8 + $0x70] sm:$0xff]  ;;  %241 = vst [vmem:[%s1668_s7 + $0x40] sm:$0xff] %v182_v6  ;;  %s1317_s21 = sshll.u32 %s2277_s17, 8  ;;  %s2262_s14 = smov %s2277_s17 }
  0x33   : >> { %243 = vst [vmem:[%s1668_s7 + $0x48] sm:$0xff] %v184_v7  ;;  %245 = vst [vmem:[%s1668_s7 + $0x50] sm:$0xff] %v186_v8  ;;  %v194_v12 = vld [vmem:[%s1672_s8 + $0x78] sm:$0xff]  ;;  %v196_v13 = vld [vmem:[%s1672_s8 + $0x80] sm:$0xff]  ;;  %s297_s22 = scalar_lea.vmem %s1806_s28, %s1317_s21   ;;  %s298_s23 = scalar_lea.vmem %s1810_s3, %s1317_s21 [#allocation2]  }
  0x34   : >> { %v198_v14 = vld [vmem:[%s1672_s8 + $0x88] sm:$0xff]  ;;  %247 = vst [vmem:[%s1668_s7 + $0x58] sm:$0xff] %v188_v9  ;;  %249 = vst [vmem:[%s1668_s7 + $0x60] sm:$0xff] %v190_v10  ;;  %v200_v15 = vld [vmem:[%s1672_s8 + $0x90] sm:$0xff] }
  0x35   : >> { %251 = vst [vmem:[%s1668_s7 + $0x68] sm:$0xff] %v192_v11  ;;  %v202_v16 = vld [vmem:[%s1672_s8 + $0x98] sm:$0xff]  ;;  %v204_v17 = vld [vmem:[%s1672_s8 + $0xa0] sm:$0xff]  ;;  %253 = vst [vmem:[%s1668_s7 + $0x70] sm:$0xff] %v194_v12 }
  0x36   : >> { %255 = vst [vmem:[%s1668_s7 + $0x78] sm:$0xff] %v196_v13  ;;  %257 = vst [vmem:[%s1668_s7 + $0x80] sm:$0xff] %v198_v14  ;;  %v206_v18 = vld [vmem:[%s1672_s8 + $0xa8] sm:$0xff]  ;;  %v208_v19 = vld [vmem:[%s1672_s8 + $0xb0] sm:$0xff] }
  0x37   : >> { %v210_v20 = vld [vmem:[%s1672_s8 + $0xb8] sm:$0xff]  ;;  %259 = vst [vmem:[%s1668_s7 + $0x88] sm:$0xff] %v200_v15  ;;  %261 = vst [vmem:[%s1668_s7 + $0x90] sm:$0xff] %v202_v16  ;;  %v212_v21 = vld [vmem:[%s1672_s8 + $0xc0] sm:$0xff] }
  0x38   : >> { %263 = vst [vmem:[%s1668_s7 + $0x98] sm:$0xff] %v204_v17  ;;  %v214_v22 = vld [vmem:[%s1672_s8 + $0xc8] sm:$0xff]  ;;  %v216_v23 = vld [vmem:[%s1672_s8 + $0xd0] sm:$0xff]  ;;  %265 = vst [vmem:[%s1668_s7 + $0xa0] sm:$0xff] %v206_v18 }
  0x39   : >> { %267 = vst [vmem:[%s1668_s7 + $0xa8] sm:$0xff] %v208_v19  ;;  %269 = vst [vmem:[%s1668_s7 + $0xb0] sm:$0xff] %v210_v20  ;;  %v218_v24 = vld [vmem:[%s1672_s8 + $0xd8] sm:$0xff]  ;;  %v220_v25 = vld [vmem:[%s1672_s8 + $0xe0] sm:$0xff] }
  0x3a   : >> { %v222_v26 = vld [vmem:[%s1672_s8 + $0xe8] sm:$0xff]  ;;  %271 = vst [vmem:[%s1668_s7 + $0xb8] sm:$0xff] %v212_v21  ;;  %273 = vst [vmem:[%s1668_s7 + $0xc0] sm:$0xff] %v214_v22  ;;  %v224_v27 = vld [vmem:[%s1672_s8 + $0xf0] sm:$0xff] }
  0x3b   : >> { %275 = vst [vmem:[%s1668_s7 + $0xc8] sm:$0xff] %v216_v23  ;;  %v226_v28 = vld [vmem:[%s1672_s8 + $0xf8] sm:$0xff]  ;;  %v164_v29 = vld [vmem:[%s1672_s8] sm:$0xff]  ;;  %277 = vst [vmem:[%s1668_s7 + $0xd0] sm:$0xff] %v218_v24 }
  0x3c   : >> { %279 = vst [vmem:[%s1668_s7 + $0xd8] sm:$0xff] %v220_v25  ;;  %281 = vst [vmem:[%s1668_s7 + $0xe0] sm:$0xff] %v222_v26  ;;  %v166_v30 = vld [vmem:[%s1672_s8 + $0x8] sm:$0xff]  ;;  %v286_v31 = vld [vmem:[%s1672_s8 + $0x100] sm:$0xff]  ;;  %160 = sbr.rel (!%p157_p3) target bundleno = 46 (0x2e), region = 152 }
  0x3d   : >> { %165 = vst [vmem:[%s1668_s7] sm:$0xff] %v164_v29  ;;  %283 = vst [vmem:[%s1668_s7 + $0xe8] sm:$0xff] %v224_v27  ;;  %v288_v32 = vld [vmem:[%s1672_s8 + $0x108] sm:$0xff]  ;;  %v290_v33 = vld [vmem:[%s1672_s8 + $0x110] sm:$0xff]  ;;  %s2261_s8 = smov %s297_s22 }
  0x3e   : >> { %285 = vst [vmem:[%s1668_s7 + $0xf0] sm:$0xff] %v226_v28  ;;  %167 = vst [vmem:[%s1668_s7 + $0x8] sm:$0xff] %v166_v30 }
  0x3f   : >> { %287 = vst [vmem:[%s1668_s7 + $0xf8] sm:$0xff] %v286_v31  ;;  %289 = vst [vmem:[%s1668_s7 + $0x100] sm:$0xff] %v288_v32 }
  0x40   : >> { %291 = vst [vmem:[%s1668_s7 + $0x108] sm:$0xff] %v290_v33  ;;  %s2260_s7 = smov %s298_s23 }
  0x41 PF: > { %s1934_s24 = sand.u32 31, %s151_s5   ;;  %s1363_s25 = sshll.u32 %s1821_s6, 12 }
  0x42   : > { %s303_s26 = sshra.s32 %s1363_s25, 4  ;;  %p1322_p4 = scmp.le.s32.totalorder %s1934_s24, 0 }
  0x43   : > { %s1938_s27 = scalar_lea.vmem %s1806_s28, %s303_s26   ;;  %s307_s29 = scalar_lea.vmem %s1810_s3, %s303_s26 [#allocation2]  }
  0x44   : > { %1247 = sbr.rel (%p1322_p4) target bundleno = 81 (0x51), region = 157  ;;  %s1682_s17 = smov (!%p1322_p4), %s307_s29  }
  0x45   : > { %s1686_s16 = smov (!%p1322_p4), %s1938_s27   ;;  %s1690_s21 = smov (!%p1322_p4), 0  }
  0x46   : > { %s1694_s7 = smov (!%p1322_p4), 0  }
  0x49 LB: >> { %v319_v34 = vld [vmem:[%s1688_s16] sm:$0xff]  ;;  %v321_v35 = vld [vmem:[%s1688_s16 + $0x18] sm:$0xff]  ;;  %s323_s5 = sadd.s32 1, %s1692_s21  ;;  %s313_s7 = sadd.s32 1, %s1696_s7   ;;  %s1696_s7 = sphi %s1694_s7, %s313_s7   ;;  %s1692_s21 = sphi %s1690_s21, %s1691_s21   ;;  %s1688_s16 = sphi %s1686_s16, %s328_s16   ;;  %s1684_s17 = sphi %s1682_s17, %s329_s17  }
  0x4a   : >> { %320 = vst [vmem:[%s1684_s17] sm:$0xff] %v319_v34  ;;  %322 = vst [vmem:[%s1684_s17 + $0x10] sm:$0xff] %v321_v35  ;;  %p324_p5 = scmp.ge.s32.totalorder %s323_s5, %s1934_s24  ;;  %p312_p7 = scmp.ge.s32.totalorder %s313_s7, %s1934_s24 }
  0x4c   : >> { %s2279_s5 = smov (%p324_p5, %s323_s5), 0  ;;  %315 = sbr.rel (!%p312_p7) target bundleno = 73 (0x49), region = 163 }
  0x4d   : >> { %s1323_s6 = sshll.u32 %s2279_s5, 3  ;;  %s1691_s21 = smov %s2279_s5  }
  0x4e   : >> { %s328_s16 = scalar_lea.vmem %s1938_s27, %s1323_s6   ;;  %s329_s17 = scalar_lea.vmem %s307_s29, %s1323_s6 [#allocation2]  }
  0x51 PF: > { %332 = sbr.rel (%p147_p13) target bundleno = 131 (0x83), region = 65  ;;  %s334_s8 = ssub.s32 (!%p147_p13), %s1808_s30, %s1814_s4 }
  0x52   : > { %s338_s14 = sshrl.u32 (!%p147_p13), %s1808_s30, 3  ;;  %s1952_s22 = scalar_lea.vmem (!%p147_p13), %s1806_s28, %s334_s8 }
  0x53   : > { %s1955_s23 = scalar_lea.vmem (!%p147_p13), %s1810_s3, %s334_s8 [#allocation2]  ;;  %s1959_s25 = sshrl.u32 (!%p147_p13), %s338_s14, 5 }
  0x54   : > { %p1325_p10 = scmp.le.s32.totalorder (!%p147_p13), %s1959_s25, 0 }
  0x56   : > { %1261 = sbr.rel (%p1325_p10) target bundleno = 110 (0x6e), region = 168  ;;  %s2263_s24 = smov (!%p1325_p10), %s1810_s3 }
  0x57   : > { %s2264_s26 = smov (!%p1325_p10), %s1806_s28  ;;  %s1968_s27 = smov (!%p1325_p10), 0  }
  0x58   : > { %s1970_s29 = smov (!%p1325_p10), 0  }
  0x5b LB: >> { %v357_v36 = vld [vmem:[%s1704_s26 + $0x18] sm:$0xff]  ;;  %v359_v37 = vld [vmem:[%s1704_s26 + $0x20] sm:$0xff]  ;;  %v361_v38 = vld [vmem:[%s1704_s26 + $0x28] sm:$0xff]  ;;  %s479_s17 = sadd.s32 1, %s1708_s27  ;;  %s345_s29 = sadd.s32 1, %s1712_s29   ;;  %s1712_s29 = sphi %s1970_s29, %s345_s29   ;;  %s1708_s27 = sphi %s1968_s27, %s2267_s27   ;;  %s1704_s26 = sphi %s2264_s26, %s2266_s26   ;;  %s1700_s24 = sphi %s2263_s24, %s2265_s24  }
  0x5c   : >> { %v363_v39 = vld [vmem:[%s1704_s26 + $0x30] sm:$0xff]  ;;  %v365_v40 = vld [vmem:[%s1704_s26 + $0x38] sm:$0xff]  ;;  %v367_v41 = vld [vmem:[%s1704_s26 + $0x40] sm:$0xff]  ;;  %416 = vst [vmem:[%s1700_s24 + $0x10] sm:$0xff] %v357_v36  ;;  %p480_p11 = scmp.ge.s32.totalorder %s479_s17, %s1959_s25  ;;  %p344_p12 = scmp.ge.s32.totalorder %s345_s29, %s1959_s25 }
  0x5d   : >> { %418 = vst [vmem:[%s1700_s24 + $0x18] sm:$0xff] %v359_v37  ;;  %420 = vst [vmem:[%s1700_s24 + $0x20] sm:$0xff] %v361_v38  ;;  %v369_v42 = vld [vmem:[%s1704_s26 + $0x48] sm:$0xff]  ;;  %v371_v43 = vld [vmem:[%s1704_s26 + $0x50] sm:$0xff] }
  0x5e   : >> { %v373_v44 = vld [vmem:[%s1704_s26 + $0x58] sm:$0xff]  ;;  %422 = vst [vmem:[%s1700_s24 + $0x28] sm:$0xff] %v363_v39  ;;  %424 = vst [vmem:[%s1700_s24 + $0x30] sm:$0xff] %v365_v40  ;;  %v375_v45 = vld [vmem:[%s1704_s26 + $0x60] sm:$0xff]  ;;  %s2281_s17 = smov (%p480_p11, %s479_s17), 0 }
  0x5f   : >> { %426 = vst [vmem:[%s1700_s24 + $0x38] sm:$0xff] %v367_v41  ;;  %v377_v46 = vld [vmem:[%s1704_s26 + $0x68] sm:$0xff]  ;;  %v379_v47 = vld [vmem:[%s1704_s26 + $0x70] sm:$0xff]  ;;  %428 = vst [vmem:[%s1700_s24 + $0x40] sm:$0xff] %v369_v42  ;;  %s1326_s16 = sshll.u32 %s2281_s17, 8  ;;  %s2267_s27 = smov %s2281_s17 }
  0x60   : >> { %430 = vst [vmem:[%s1700_s24 + $0x48] sm:$0xff] %v371_v43  ;;  %432 = vst [vmem:[%s1700_s24 + $0x50] sm:$0xff] %v373_v44  ;;  %v381_v48 = vld [vmem:[%s1704_s26 + $0x78] sm:$0xff]  ;;  %v383_v49 = vld [vmem:[%s1704_s26 + $0x80] sm:$0xff]  ;;  %s484_s21 = scalar_lea.vmem %s1806_s28, %s1326_s16   ;;  %s485_s7 = scalar_lea.vmem %s1810_s3, %s1326_s16 [#allocation2]  }
  0x61   : >> { %v385_v50 = vld [vmem:[%s1704_s26 + $0x88] sm:$0xff]  ;;  %434 = vst [vmem:[%s1700_s24 + $0x58] sm:$0xff] %v375_v45  ;;  %436 = vst [vmem:[%s1700_s24 + $0x60] sm:$0xff] %v377_v46  ;;  %v387_v51 = vld [vmem:[%s1704_s26 + $0x90] sm:$0xff] }
  0x62   : >> { %438 = vst [vmem:[%s1700_s24 + $0x68] sm:$0xff] %v379_v47  ;;  %v389_v52 = vld [vmem:[%s1704_s26 + $0x98] sm:$0xff]  ;;  %v391_v53 = vld [vmem:[%s1704_s26 + $0xa0] sm:$0xff]  ;;  %440 = vst [vmem:[%s1700_s24 + $0x70] sm:$0xff] %v381_v48 }
  0x63   : >> { %442 = vst [vmem:[%s1700_s24 + $0x78] sm:$0xff] %v383_v49  ;;  %444 = vst [vmem:[%s1700_s24 + $0x80] sm:$0xff] %v385_v50  ;;  %v393_v54 = vld [vmem:[%s1704_s26 + $0xa8] sm:$0xff]  ;;  %v395_v55 = vld [vmem:[%s1704_s26 + $0xb0] sm:$0xff] }
  0x64   : >> { %v397_v56 = vld [vmem:[%s1704_s26 + $0xb8] sm:$0xff]  ;;  %446 = vst [vmem:[%s1700_s24 + $0x88] sm:$0xff] %v387_v51  ;;  %448 = vst [vmem:[%s1700_s24 + $0x90] sm:$0xff] %v389_v52  ;;  %v399_v57 = vld [vmem:[%s1704_s26 + $0xc0] sm:$0xff] }
  0x65   : >> { %450 = vst [vmem:[%s1700_s24 + $0x98] sm:$0xff] %v391_v53  ;;  %v401_v58 = vld [vmem:[%s1704_s26 + $0xc8] sm:$0xff]  ;;  %v403_v59 = vld [vmem:[%s1704_s26 + $0xd0] sm:$0xff]  ;;  %452 = vst [vmem:[%s1700_s24 + $0xa0] sm:$0xff] %v393_v54 }
  0x66   : >> { %454 = vst [vmem:[%s1700_s24 + $0xa8] sm:$0xff] %v395_v55  ;;  %456 = vst [vmem:[%s1700_s24 + $0xb0] sm:$0xff] %v397_v56  ;;  %v405_v60 = vld [vmem:[%s1704_s26 + $0xd8] sm:$0xff]  ;;  %v407_v61 = vld [vmem:[%s1704_s26 + $0xe0] sm:$0xff] }
  0x67   : >> { %v409_v62 = vld [vmem:[%s1704_s26 + $0xe8] sm:$0xff]  ;;  %458 = vst [vmem:[%s1700_s24 + $0xb8] sm:$0xff] %v399_v57  ;;  %460 = vst [vmem:[%s1700_s24 + $0xc0] sm:$0xff] %v401_v58  ;;  %v411_v63 = vld [vmem:[%s1704_s26 + $0xf0] sm:$0xff] }
  0x68   : >> { %462 = vst [vmem:[%s1700_s24 + $0xc8] sm:$0xff] %v403_v59  ;;  %v413_v0 = vld [vmem:[%s1704_s26 + $0xf8] sm:$0xff]  ;;  %v351_v1 = vld [vmem:[%s1704_s26] sm:$0xff]  ;;  %464 = vst [vmem:[%s1700_s24 + $0xd0] sm:$0xff] %v405_v60 }
  0x69   : >> { %466 = vst [vmem:[%s1700_s24 + $0xd8] sm:$0xff] %v407_v61  ;;  %468 = vst [vmem:[%s1700_s24 + $0xe0] sm:$0xff] %v409_v62  ;;  %v353_v2 = vld [vmem:[%s1704_s26 + $0x8] sm:$0xff]  ;;  %v473_v3 = vld [vmem:[%s1704_s26 + $0x100] sm:$0xff]  ;;  %347 = sbr.rel (!%p344_p12) target bundleno = 91 (0x5b), region = 174 }
  0x6a   : >> { %352 = vst [vmem:[%s1700_s24] sm:$0xff] %v351_v1  ;;  %470 = vst [vmem:[%s1700_s24 + $0xe8] sm:$0xff] %v411_v63  ;;  %v475_v4 = vld [vmem:[%s1704_s26 + $0x108] sm:$0xff]  ;;  %v477_v5 = vld [vmem:[%s1704_s26 + $0x110] sm:$0xff]  ;;  %s2266_s26 = smov %s484_s21 }
  0x6b   : >> { %472 = vst [vmem:[%s1700_s24 + $0xf0] sm:$0xff] %v413_v0  ;;  %354 = vst [vmem:[%s1700_s24 + $0x8] sm:$0xff] %v353_v2 }
  0x6c   : >> { %474 = vst [vmem:[%s1700_s24 + $0xf8] sm:$0xff] %v473_v3  ;;  %476 = vst [vmem:[%s1700_s24 + $0x100] sm:$0xff] %v475_v4 }
  0x6d   : >> { %478 = vst [vmem:[%s1700_s24 + $0x108] sm:$0xff] %v477_v5  ;;  %s2265_s24 = smov %s485_s7 }
  0x6e PF: > { %s2072_s5 = sand.u32 31, %s338_s14   ;;  %s1365_s6 = sshll.u32 %s1959_s25, 12 }
  0x6f   : > { %s490_s8 = sshra.s32 %s1365_s6, 4  ;;  %p1331_p13 = scmp.le.s32.totalorder %s2072_s5, 0 }
  0x70   : > { %s2076_s16 = scalar_lea.vmem %s1806_s28, %s490_s8   ;;  %s494_s7 = scalar_lea.vmem %s1810_s3, %s490_s8 [#allocation2]  }
  0x71   : > { %1275 = sbr.rel (%p1331_p13) target bundleno = 126 (0x7e), region = 179  ;;  %s1714_s17 = smov (!%p1331_p13), %s494_s7  }
  0x72   : > { %s1718_s29 = smov (!%p1331_p13), %s2076_s16   ;;  %s1722_s21 = smov (!%p1331_p13), 0  }
  0x73   : > { %s1726_s24 = smov (!%p1331_p13), 0  }
  0x76 LB: >> { %v506_v6 = vld [vmem:[%s1720_s29] sm:$0xff]  ;;  %v508_v7 = vld [vmem:[%s1720_s29 + $0x18] sm:$0xff]  ;;  %s510_s14 = sadd.s32 1, %s1724_s21  ;;  %s500_s24 = sadd.s32 1, %s1728_s24   ;;  %s1728_s24 = sphi %s1726_s24, %s500_s24   ;;  %s1724_s21 = sphi %s1722_s21, %s1723_s21   ;;  %s1720_s29 = sphi %s1718_s29, %s515_s29   ;;  %s1716_s17 = sphi %s1714_s17, %s516_s17  }
  0x77   : >> { %507 = vst [vmem:[%s1716_s17] sm:$0xff] %v506_v6  ;;  %509 = vst [vmem:[%s1716_s17 + $0x10] sm:$0xff] %v508_v7  ;;  %p511_p0 = scmp.ge.s32.totalorder %s510_s14, %s2072_s5  ;;  %p499_p1 = scmp.ge.s32.totalorder %s500_s24, %s2072_s5 }
  0x79   : >> { %s2283_s14 = smov (%p511_p0, %s510_s14), 0  ;;  %502 = sbr.rel (!%p499_p1) target bundleno = 118 (0x76), region = 185 }
  0x7a   : >> { %s1332_s25 = sshll.u32 %s2283_s14, 3  ;;  %s1723_s21 = smov %s2283_s14  }
  0x7b   : >> { %s515_s29 = scalar_lea.vmem %s2076_s16, %s1332_s25   ;;  %s516_s17 = scalar_lea.vmem %s494_s7, %s1332_s25 [#allocation2]  }
  0x7e PF: > { %s1730_s26 = smov 1  }
  0x7f   : > { %s517_s27 = sshll.u32 %s1730_s26, %s1814_s4 }
  0x80   : > { %s1334_s6 = sadd.s32 4294967295, %s517_s27 }
  0x81   : > { %v527_v8 = vld [vmem:[%s1952_s22] sm:%s1334_s6]  ;;  %v529_v9 = vld [vmem:[%s1952_s22 + $0x18] sm:%s1334_s6] }
  0x82   : > { %528 = vst [vmem:[%s1955_s23] sm:%s1334_s6] %v527_v8  ;;  %530 = vst [vmem:[%s1955_s23 + $0x10] sm:%s1334_s6] %v529_v9 }
  0x83 PF: > { %p1335_p2 = scmp.ge.u32.totalorder %s1808_s30, 8 }
  0x84   : > { %s1731_s8 = smov (!%p1335_p2), 1  }
  0x85   : > { %131 = sbr.rel (%p1335_p2) target bundleno = 140 (0x8c), region = 36  ;;  %s132_s5 = sshll.u32 (!%p1335_p2), %s1731_s8, %s1808_s30 }
  0x86   : > { %s1336_s16 = sadd.s32 (!%p1335_p2), 4294967295, %s132_s5 }
  0x8a   : > { %v142_v10 = vld [vmem:[%s1806_s28] sm:%s1336_s16]  ;;  %v144_v11 = vld [vmem:[%s1806_s28 + $0x18] sm:%s1336_s16] }
  0x8b   : > { %143 = vst [vmem:[%s1810_s3] sm:%s1336_s16] %v142_v10  ;;  %145 = vst [vmem:[%s1810_s3 + $0x10] sm:%s1336_s16] %v144_v11 }
  0x8c PF: > { %p1337_p3 = scmp.ge.s32.totalorder %s1664_s12, 1  ;;  %p533_p4 = scmp.lt.s32.totalorder %s1664_s12, 3 }
  0x8e   : > { %p534_p5 = pnand %p1337_p3, %p533_p4 }
  0x8f   : > { %s2098_s4 = sand.u32 (!%p534_p5), 1, %s1656_s10  }
  0x90   : > { %537 = sbr.rel (%p534_p5) target bundleno = 1028 (0x404), region = 90  ;;  %s1338_s30 = sshll.u32 (!%p534_p5), %s2098_s4, 5 }
  0x91   : > { %s542_s28 = scalar_lea.vmem (!%p534_p5), [#allocation2], %s1338_s30  ;;  %s1339_s17 = sshll.u32 (!%p534_p5), %s2098_s4, 4 }
  0x92   : > { %s560_s29 = scalar_lea.vmem (!%p534_p5), [#allocation3], %s1339_s17  ;;  %s1138_s21 = scalar_lea.sflag (!%p534_p5), [#allocation4], %s2098_s4 }
  0x95   : > { %v676_v12 = vlaneseq  ;;  %v1732_v13 = vmov 1966171168   ;;  %v1733_v15 = vmov 0.0   ;;  %v574_v17 = vld [vmem:[%s542_s28 + $0x18] sm:$0xff]  ;;  %v573_v18 = vld [vmem:[%s542_s28 + $0x10] sm:$0xff]  ;;  %v572_v20 = vld [vmem:[%s542_s28 + $0x8] sm:$0xff] }
  0x96   : > { %v674_v14 = vunpack.c.l.s4 %v1732_v13  ;;  %657 = vmatprep.mubr.f32.mxu1 %v1733_v15  ;;  %983 = vmatprep.mubr.f32.mxu0 %v1733_v15  ;;  %v822_v21 = vcombine.low %v573_v18, %v574_v17  ;;  %v571_v22 = vld [vmem:[%s542_s28] sm:$0xff]  ;;  %vm586_vm0 = vcmask 130048   ;;  %v576_v30 = vld [vmem:[%s2254_s1 + $0x8] sm:$0xff]  ;;  %v577_v57 = vld [vmem:[%s2254_s1 + $0x10] sm:$0xff]  ;;  %vm745_vm1 = vcmask 261120   ;;  %s1354_s24 = sshll.u32 (%p1789_p6), %s1771_s13, 1 }
  0x97   : > { %v2104_v16 = vshrl.u32 %v676_v12, 7  ;;  %621 = vmatprep.subr.mxu1 %v574_v17  ;;  %v672_v24 = vcombine.high %v571_v22, %v572_v20  ;;  %v575_v25 = vld [vmem:[%s2254_s1] sm:$0xff]  ;;  %vm1060_vm5 = vcmask 523264   ;;  %s1146_s14 = ssub.s32 (%p1789_p6), 3, %s1354_s24 }
  0x98   : > { %v675_v19 = vunpack.c.0.s8 %v674_v14  ;;  %622 = vmatpush1.msra.mxu1 %v573_v18  ;;  %p1147_p7 = scmp.lt.s32.totalorder (%p1789_p6), %s1146_s14, 2 }
  0x99   : > { %623 = vmatprep.subr.mxu1 %v572_v20  ;;  %v703_v35 = vsub.s32 1, %v2104_v16  ;;  %v699_v37 = vsub.s32 0, %v2104_v16  ;;  %v579_v20 = vld [vmem:[%s2254_s1 + $0x20] sm:$0xff] }
  0x9a   : > { %v678_v23 = vsub.s32 %v675_v19, %v2104_v16  ;;  %624 = vmatpush1.msra.mxu1 %v571_v22  ;;  %v578_v19 = vld [vmem:[%s2254_s1 + $0x18] sm:$0xff]  ;;  %v581_v22 = vld [vmem:[%s2254_s1 + $0x30] sm:$0xff] }
  0x9b   : > { %1340 = vmatmul.mubr.msk.f32.vlgmr.msra.gmra.mxu1 %vm586_vm0, %v575_v25  ;;  %v584_v25 = vld [vmem:[%s2254_s1 + $0x48] sm:$0xff] }
  0x9c   : > { %v829_v26 = vrot.slane %v822_v21, %v678_v23  ;;  %663 = vmatprep.mubr.f32.mxu1 %v1733_v15  ;;  %v679_v31 = vrot.slane %v672_v24, %v678_v23  ;;  %v580_v21 = vld [vmem:[%s2254_s1 + $0x28] sm:$0xff]  ;;  %v583_v24 = vld [vmem:[%s2254_s1 + $0x40] sm:$0xff] }
  0x9e   : > { %v830_v27 = vcombine.high %v829_v26, %v829_v26  ;;  %v2110_v28 = vrot.slane %v829_v26, %v678_v23  ;;  %v680_v32 = vcombine.high %v679_v31, %v679_v31  ;;  %v687_v34 = vrot.slane %v679_v31, %v678_v23  ;;  %v585_v26 = vld [vmem:[%s2254_s1 + $0x50] sm:$0xff] }
  0x9f   : > { %1341 = vmatmul.mubr.msk.f32.gmra.mxu1 %vm586_vm0, %v576_v30 }
  0xa0   : > { %v2113_v29 = vrot.slane %v830_v27, %v678_v23  ;;  %813 = vmatprep.mubr.f32.mxu1 %v1733_v15  ;;  %v694_v33 = vrot.slane %v680_v32, %v678_v23  ;;  %v695_v38 = vcombine.high %v687_v34, %v687_v34  ;;  %v704_v50 = vrot.slane %v687_v34, %v703_v35  ;;  %v582_v23 = vld [vmem:[%s2254_s1 + $0x38] sm:$0xff] }
  0xa1   : > { %v700_v51 = vrot.slane %v687_v34, %v699_v37  ;;  %v845_v61 = vcombine.high %v2110_v28, %v2110_v28  ;;  %v854_v9 = vrot.slane %v2110_v28, %v703_v35  ;;  %v850_v11 = vrot.slane %v2110_v28, %v699_v37 }
  0xa2   : > { %v696_v36 = vcombine.high %v694_v33, %v694_v33  ;;  %v720_v42 = vrot.slane %v695_v38, %v703_v35  ;;  %v716_v43 = vrot.slane %v695_v38, %v699_v37  ;;  %v712_v46 = vrot.slane %v694_v33, %v703_v35 }
  0xa3   : > { %v708_v47 = vrot.slane %v694_v33, %v699_v37  ;;  %v846_v59 = vcombine.high %v2113_v29, %v2113_v29  ;;  %v870_v1 = vrot.slane %v845_v61, %v703_v35  ;;  %v866_v3 = vrot.slane %v845_v61, %v699_v37 }
  0xa4   : > { %v728_v39 = vrot.slane %v696_v36, %v703_v35  ;;  %v724_v41 = vrot.slane %v696_v36, %v699_v37  ;;  %v862_v5 = vrot.slane %v2113_v29, %v703_v35  ;;  %v858_v7 = vrot.slane %v2113_v29, %v699_v37 }
  0xa5   : > { %v878_v62 = vrot.slane %v846_v59, %v703_v35  ;;  %v874_v0 = vrot.slane %v846_v59, %v699_v37 }
 0x15b   : > { %v659_v40 = vpop.f32.mrf.mxu1 }
 0x15c   : > { %v743_v48 = vmul.f32 %v724_v41, %v659_v40  ;;  %v741_v52 = vmul.f32 %v716_v43, %v659_v40  ;;  %v739_v54 = vmul.f32 %v708_v47, %v659_v40  ;;  %v737_v56 = vmul.f32 %v700_v51, %v659_v40 }
 0x15d   : > { %v661_v44 = vpop.f32.mrf.mxu1  ;;  %v1052_v51 = vmul.u32 8, %v2104_v16 }
 0x15e   : > { %v744_v45 = vmul.f32 %v728_v39, %v661_v44  ;;  %v742_v49 = vmul.f32 %v720_v42, %v661_v44  ;;  %v740_v53 = vmul.f32 %v712_v46, %v661_v44  ;;  %v738_v55 = vmul.f32 %v704_v50, %v661_v44 }
 0x15f   : > { %v2126_v58 = vpop.f32.mrf.mxu1  ;;  %v1051_v50 = vand.u32 127, %v676_v12 }
 0x160   : > { %773 = vmatprep.subr.mxu1 %v744_v45  ;;  %v1054_v45 = vadd.s32 1, %v2104_v16 }
 0x161   : > { %774 = vmatpush1.msra.mxu1 %v743_v48  ;;  %v2130_v60 = vpop.f32.mrf.mxu1  ;;  %vm2190_vm2 = vcmp.ge.s32.totalorder %v1051_v50, %v1052_v51 }
 0x162   : > { %775 = vmatprep.subr.mxu1 %v742_v49 }
 0x163   : > { %776 = vmatpush1.msra.mxu1 %v741_v52  ;;  %v1055_v52 = vmul.u32 8, %v1054_v45 }
 0x164   : > { %777 = vmatprep.subr.mxu1 %v740_v53 }
 0x165   : > { %778 = vmatpush1.msra.mxu1 %v739_v54  ;;  %vm1056_vm3 = vcmp.lt.s32.totalorder %v1051_v50, %v1055_v52 }
 0x166   : > { %779 = vmatprep.subr.mxu1 %v738_v55  ;;  %vm1057_vm4 = vmand %vm2190_vm2, %vm1056_vm3 }
 0x167   : > { %780 = vmatpush1.msra.mxu1 %v737_v56 }
 0x168   : > { %1342 = vmatmul.mubr.msk.f32.vlgmr.msra.gmra.mxu1 %vm745_vm1, %v577_v57 }
 0x169   : > { %1128 = vmatprep.mubr.f32.mxu1 %v1733_v15 }
 0x228   : > { %v815_v63 = vpop.f32.mrf.mxu1 }
 0x229   : > { %v893_v6 = vmul.f32 %v874_v0, %v815_v63  ;;  %v891_v10 = vmul.f32 %v866_v3, %v815_v63  ;;  %v889_v14 = vmul.f32 %v858_v7, %v815_v63  ;;  %v887_v18 = vmul.f32 %v850_v11, %v815_v63 }
 0x22a   : > { %v817_v2 = vpop.f32.mrf.mxu1  ;;  %v1351_v0 = vsel %vm1057_vm4, 1.0, %v1733_v15 }
 0x22b   : > { %v894_v4 = vmul.f32 %v878_v62, %v817_v2  ;;  %v892_v8 = vmul.f32 %v870_v1, %v817_v2  ;;  %v890_v13 = vmul.f32 %v862_v5, %v817_v2  ;;  %v888_v17 = vmul.f32 %v854_v9, %v817_v2 }
 0x22d   : > { %943 = vmatprep.subr.mxu0 %v894_v4 }
 0x22e   : > { %944 = vmatpush1.msra.mxu0 %v893_v6 }
 0x22f   : > { %945 = vmatprep.subr.mxu0 %v892_v8 }
 0x230   : > { %946 = vmatpush1.msra.mxu0 %v891_v10 }
 0x231   : > { %947 = vmatprep.subr.mxu0 %v890_v13 }
 0x232   : > { %948 = vmatpush1.msra.mxu0 %v889_v14 }
 0x233   : > { %949 = vmatprep.subr.mxu0 %v888_v17 }
 0x234   : > { %950 = vmatpush1.msra.mxu0 %v887_v18 }
 0x235   : > { %1343 = vmatmul.mubr.msk.f32.vlgmr.msra.gmra.mxu0 %vm745_vm1, %v578_v19 }
 0x236   : > { %989 = vmatprep.mubr.f32.mxu0 %v1733_v15 }
 0x239   : > { %1344 = vmatmul.mubr.msk.f32.gmra.mxu0 %vm745_vm1, %v579_v20 }
 0x23a   : > { %995 = vmatprep.mubr.f32.mxu0 %v1733_v15 }
 0x23d   : > { %1345 = vmatmul.mubr.msk.f32.gmra.mxu0 %vm745_vm1, %v580_v21 }
 0x23e   : > { %1001 = vmatprep.mubr.f32.mxu0 %v1733_v15 }
 0x241   : > { %1346 = vmatmul.mubr.msk.f32.gmra.mxu0 %vm745_vm1, %v581_v22 }
 0x242   : > { %1007 = vmatprep.mubr.f32.mxu0 %v1733_v15 }
 0x245   : > { %1347 = vmatmul.mubr.msk.f32.gmra.mxu0 %vm745_vm1, %v582_v23 }
 0x246   : > { %1013 = vmatprep.mubr.f32.mxu0 %v1733_v15 }
 0x249   : > { %1348 = vmatmul.mubr.msk.f32.gmra.mxu0 %vm745_vm1, %v583_v24 }
 0x24a   : > { %1019 = vmatprep.mubr.f32.mxu0 %v1733_v15 }
 0x24d   : > { %1349 = vmatmul.mubr.msk.f32.gmra.mxu0 %vm745_vm1, %v584_v25 }
 0x24e   : > { %1025 = vmatprep.mubr.f32.mxu0 %v1733_v15 }
 0x251   : > { %1350 = vmatmul.mubr.msk.f32.gmra.mxu0 %vm745_vm1, %v585_v26 }
 0x2f5   : > { %v985_v27 = vpop.f32.mrf.mxu0 }
 0x2f6   : > { %v1032_v63 = vmul.f32 %v985_v27, %v2126_v58 }
 0x2f7   : > { %v987_v28 = vpop.f32.mrf.mxu0 }
 0x2f8   : > { %v1033_v62 = vmul.f32 %v987_v28, %v2130_v60 }
 0x2f9   : > { %v991_v29 = vpop.f32.mrf.mxu0 }
 0x2fa   : > { %v1034_v61 = vmul.f32 %v991_v29, %v2126_v58 }
 0x2fb   : > { %v993_v30 = vpop.f32.mrf.mxu0 }
 0x2fc   : > { %v1035_v59 = vmul.f32 %v993_v30, %v2130_v60 }
 0x2fd   : > { %v997_v31 = vpop.f32.mrf.mxu0 }
 0x2fe   : > { %v1036_v16 = vmul.f32 %v997_v31, %v2126_v58 }
 0x2ff   : > { %v999_v32 = vpop.f32.mrf.mxu0 }
 0x300   : > { %v1037_v12 = vmul.f32 %v999_v32, %v2130_v60 }
 0x301   : > { %v1003_v33 = vpop.f32.mrf.mxu0 }
 0x302   : > { %v1038_v56 = vmul.f32 %v1003_v33, %v2126_v58 }
 0x303   : > { %v1005_v34 = vpop.f32.mrf.mxu0 }
 0x304   : > { %v1039_v55 = vmul.f32 %v1005_v34, %v2130_v60 }
 0x305   : > { %v1009_v35 = vpop.f32.mrf.mxu0 }
 0x306   : > { %v1040_v54 = vmul.f32 %v1009_v35, %v2126_v58 }
 0x307   : > { %v1011_v36 = vpop.f32.mrf.mxu0 }
 0x308   : > { %v1041_v53 = vmul.f32 %v1011_v36, %v2130_v60 }
 0x309   : > { %v1015_v37 = vpop.f32.mrf.mxu0 }
 0x30a   : > { %v1042_v49 = vmul.f32 %v1015_v37, %v2126_v58 }
 0x30b   : > { %v1017_v38 = vpop.f32.mrf.mxu0 }
 0x30c   : > { %v1043_v48 = vmul.f32 %v1017_v38, %v2130_v60 }
 0x30d   : > { %v1021_v39 = vpop.f32.mrf.mxu0 }
 0x30e   : > { %v1044_v47 = vmul.f32 %v1021_v39, %v2126_v58 }
 0x30f   : > { %v1023_v40 = vpop.f32.mrf.mxu0 }
 0x310   : > { %v1045_v46 = vmul.f32 %v1023_v40, %v2130_v60 }
 0x311   : > { %v1027_v41 = vpop.f32.mrf.mxu0 }
 0x312   : > { %v1046_v44 = vmul.f32 %v1027_v41, %v2126_v58 }
 0x313   : > { %v1029_v42 = vpop.f32.mrf.mxu0 }
 0x314   : > { %v1047_v43 = vmul.f32 %v1029_v42, %v2130_v60 }
 0x316   : > { %1080 = vmatprep.subr.mxu1 %v1047_v43 }
 0x317   : > { %1081 = vmatpush1.msra.mxu1 %v1046_v44 }
 0x318   : > { %1082 = vmatprep.subr.mxu1 %v1045_v46 }
 0x319   : > { %1083 = vmatpush1.msra.mxu1 %v1044_v47 }
 0x31a   : > { %1084 = vmatprep.subr.mxu1 %v1043_v48 }
 0x31b   : > { %1085 = vmatpush1.msra.mxu1 %v1042_v49 }
 0x31c   : > { %1086 = vmatprep.subr.mxu1 %v1041_v53 }
 0x31d   : > { %1087 = vmatpush1.msra.mxu1 %v1040_v54 }
 0x31e   : > { %1088 = vmatprep.subr.mxu1 %v1039_v55 }
 0x31f   : > { %1089 = vmatpush1.msra.mxu1 %v1038_v56 }
 0x320   : > { %1090 = vmatprep.subr.mxu1 %v1037_v12 }
 0x321   : > { %1091 = vmatpush1.msra.mxu1 %v1036_v16 }
 0x322   : > { %1092 = vmatprep.subr.mxu1 %v1035_v59 }
 0x323   : > { %1093 = vmatpush1.msra.mxu1 %v1034_v61 }
 0x324   : > { %1094 = vmatprep.subr.mxu1 %v1033_v62 }
 0x325   : > { %1095 = vmatpush1.msra.mxu1 %v1032_v63 }
 0x326   : > { %1352 = vmatmul.mubr.msk.f32.vlgmr.msra.gmra.mxu1 %vm1060_vm5, %v1351_v0 }
 0x3e5   : > { %1144 = sbr.rel (!%p1789_p6) target bundleno = 1028 (0x404), region = 98 }
 0x3e6   : > { %v1130_v1 = vpop.f32.mrf.mxu1 }
 0x3e7   : > { %1135 = vst [vmem:[%s560_s29] sm:$0xff] %v1130_v1 }
 0x3e8   : > { %v1132_v2 = vpop.f32.mrf.mxu1 }
 0x3e9   : > { %1136 = vst [vmem:[%s560_s29 + $0x8] sm:$0xff] %v1132_v2 }
 0x3ea   : > { %s2285_s14 = smov (!%p1147_p7, %s1146_s14), 2 }
 0x3eb   : > { %s2208_s25 = sshll.u32 %s2285_s14, 7 }
 0x3ec   : > { %s1151_s26 = ssub.s32 256, %s2208_s25 }
 0x3ed   : > { %1152 = vsyncadd %s1138_s21, %s1151_s26  ;;  %p1356_p10 = scmp.ne.s32.totalorder %s2208_s25, 0  ;;  %s1367_s27 = sshll.u32 %s1771_s13, 8 }
 0x3ee   : > { %s1155_s8 = scalar_lea.hbm %s2255_s2, %s1367_s27  ;;  %s1158_s5 = sshll.u32 %s560_s29, 4  ;;  %s1159_s5 = int_to_ptr.vmem [resolvable:$true] %s1158_s5 }
 0x3ef   : > { %s1540_s16 = scalar_lea.vmem %s1159_s5, %s2208_s25  ;;  %s1734_s30 = smov [#allocation3]  }
 0x3f0   : > { %p1541_p6 = scmp.ne.s32.totalorder %s1159_s5, %s1540_s16  ;;  %s1544_s28 = sshll.u32 %s1734_s30, 4  ;;  %s1545_s28 = int_to_ptr.vmem [resolvable:$false] %s1544_s28 }
 0x3f1   : > { %s1546_s3 = scalar_lea.vmem %s1545_s28, 512  ;;  %p1547_p13 = scmp.lt.s32.totalorder %s1159_s5, %s1545_s28 }
 0x3f2   : > { %p1542_p11 = pnand %p1541_p6, %p1356_p10  ;;  %p1548_p0 = scmp.lt.s32.totalorder %s1546_s3, %s1540_s16 }
 0x3f4   : > { %p1543_p12 = pneg %p1542_p11  ;;  %p1549_p1 = por %p1548_p0, %p1547_p13 }
 0x3f6   : > { %p1550_p2 = pnand %p1549_p1, %p1543_p12 }
 0x3f8   : > { %1553 = shalt.err (!%p1550_p2)
}
 0x3f9   : > { %s1554_s13 = scalar_lea.hbm %s1155_s8, %s2208_s25  ;;  %s1558_s7 = scalar_lea.hbm %s2255_s2, 384 }
 0x3fa   : > { %p1555_p3 = scmp.ne.s32.totalorder %s1155_s8, %s1554_s13  ;;  %p1559_p7 = scmp.lt.s32.totalorder %s1155_s8, %s2255_s2 }
 0x3fb   : > { %p1560_p6 = scmp.lt.s32.totalorder %s1558_s7, %s1554_s13 }
 0x3fc   : > { %p1556_p4 = pnand %p1555_p3, %p1356_p10 }
 0x3fd   : > { %p1561_p11 = por %p1560_p6, %p1559_p7 }
 0x3fe   : > { %p1557_p5 = pneg %p1556_p4 }
 0x400   : > { %p1562_p13 = pnand %p1561_p11, %p1557_p5 }
 0x402   : > { %1565 = shalt.err (!%p1562_p13)
}
 0x403   : > { %1161 = dma.vmem_to_hbm [thread:$0]  (%p1356_p10), %s1159_s5, %s2208_s25, %s1155_s8, %s1138_s21  }
 0x404 PF: > { %s1170_s24 = sand.u32 1, %s1652_s9   ;;  %p1370_p12 = pnand %p1307_p9, %p1793_p8 }
 0x405   : > { %s1171_s14 = scalar_lea.sflag [#allocation4], %s1170_s24 }
 0x406   : > { %p1371_p0 = pneg %p1370_p12 }
 0x408   : > { %1647 = dma.done.wait (%p1371_p0), %s1171_s14, 256  }
 0x409   : > { %1649 = vsyncadd (%p1371_p0), %s1171_s14, 4294967040  ;;  %p12_p1 = scmp.ge.s32.totalorder %s1775_s15, 4   ;;  %s2270_s9 = smov %s1656_s10 }
 0x40a   : > { %s2271_s10 = smov %s1660_s11  ;;  %s2272_s11 = smov %s1787_s18 }
 0x40b   : > { %s2273_s12 = smov %s1775_s15  ;;  %14 = sbr.rel (!%p12_p1) target bundleno = 3 (0x3), region = 196 }
 0x410   :  { %1176 = vsyncpa [#allocation4], 1 }
 0x411   :  { %1178 = vsyncpa [#allocation4 + $0x1], 1 }

</bundles_post_ra>
